<compile_context>
chip_gen: v6e
topology: v6e:2x2x1
jax: 0.10.0
libtpu: 0.0.40
codegen_flags: <defaults>
</compile_context>

<pallas_src>
import functools

import jax
import jax.numpy as jnp
from jax import lax
from jax.experimental import pallas as pl
from jax.experimental.pallas import tpu as pltpu


def _round_up(x, m):
    return ((x + m - 1) // m) * m


def _pick_time_chunk(t_steps, target=8):
    """Largest chunk size <= target that divides T (avoids padded timesteps)."""
    for c in range(target, 1, -1):
        if t_steps % c == 0:
            return c
    return min(target, t_steps)


# ---------------------------------------------------------------------------
# Kernel 1: recurrence over one chunk of `tc` timesteps.
#   h_t = tanh(x_t + h_{t-1} @ W_hh^T + b),  x_t = W_ih^T[token_t] (pre-gathered)
# The hidden state is resident in a VMEM scratch across grid steps; all hidden
# states are emitted (bf16) so the dense head can run as one batched matmul.
# ---------------------------------------------------------------------------
def rnn_recurrence_kernel(x_ref,        # VMEM (tc, Bp, Hp) f32  gathered embeddings
                          whh_ref,      # VMEM (Hp, Hp)     bf16 (= W_hh^T)
                          b_ref,        # VMEM (1, Hp)      f32  (= b_ih + b_hh)
                          h0_ref,       # VMEM (Bp, Hp)     f32  initial hidden state
                          h_all_ref,    # VMEM out (tc, Bp, Hp) bf16
                          h_last_ref,   # VMEM out (Bp, Hp) f32  final hidden state
                          h_scratch,    # VMEM scratch (Bp, Hp) f32
                          *, tc, t_real):
    @pl.when(pl.program_id(0) == 0)
    def _():
        h_scratch[...] = h0_ref[...]

    chunk_base = pl.program_id(0) * tc
    bias = b_ref[...]                                        # hoisted out of loop

    def step(t, carry):
        h_prev = h_scratch[...]                              # (Bp, Hp) f32
        # TODO(synk): keep W_hh^T resident in MXU weight registers across the
        # whole time loop (pltpu.matmul_push_rhs / matmul_acc_lhs / matmul_pop)
        # to cut the per-step weight-load latency; jnp.dot kept for robustness.
        hh = jnp.dot(h_prev.astype(whh_ref.dtype), whh_ref[...],
                     preferred_element_type=jnp.float32)     # bf16 MXU, f32 acc
        h = jnp.tanh(x_ref[t] + hh + bias)                   # f32 VPU/EUP
        if t_real is not None:                               # padded-time tail:
            h = jnp.where(chunk_base + t < t_real, h, h_prev)  # freeze the state
        h_scratch[...] = h
        h_all_ref[t] = h.astype(h_all_ref.dtype)
        return carry

    lax.fori_loop(0, tc, step, None, unroll=True)
    h_last_ref[...] = h_scratch[...]                         # resident; written
    #                                                        # back after last chunk


# ---------------------------------------------------------------------------
# Kernel 2: dense head, batched over all rows:  Y = H @ W_d^T + b_d
# ---------------------------------------------------------------------------
def dense_head_kernel(h_ref, wd_ref, bd_ref, y_ref):
    h = h_ref[...].astype(wd_ref.dtype)                      # (tile, Hp) bf16
    y_ref[...] = (jnp.dot(h, wd_ref[...], preferred_element_type=jnp.float32)
                  + bd_ref[...]).astype(y_ref.dtype)


def rnn_model_forward(inputs, params, state=None, *,
                      compute_dtype=jnp.bfloat16, time_chunk=None,
                      head_tile=None):
    """inputs: (batch, num_steps) int32 token ids.

    Returns (output, state):
      output: (num_steps*batch, vocab)  — matches dense(Y.view(-1, H))
      state:  (1, batch, hidden)        — matches nn.RNN final hidden state
    """
    w_ih, w_hh, b_ih, b_hh, w_d, b_d = params
    H, V = w_ih.shape
    B, T = inputs.shape

    Bp = _round_up(B, 8)        # sublane-dense hidden tiles / MXU rows
    Hp = _round_up(H, 128)      # lane-dense hidden dim
    Vp = _round_up(V, 128)      # lane-dense head output (unmasked vst)

    f32 = jnp.float32
    tc = _pick_time_chunk(T) if time_chunk is None else time_chunk
    Tp = _round_up(T, tc)

    # ---- weight prep (layout + padding + dtype); cheap one-time XLA ops ----
    emb = jnp.zeros((V, Hp), f32).at[:, :H].set(w_ih.T.astype(f32))
    whh_t = (jnp.zeros((Hp, Hp), f32).at[:H, :H].set(w_hh.T.astype(f32))
             .astype(compute_dtype))
    b_rnn = jnp.zeros((1, Hp), f32).at[0, :H].set((b_ih + b_hh).astype(f32))
    wd_t = (jnp.zeros((Hp, Vp), f32).at[:H, :V].set(w_d.T.astype(f32))
            .astype(compute_dtype))
    bd = jnp.zeros((1, Vp), f32).at[0, :V].set(b_d.astype(f32))

    # ---- embedding gather hoisted out of the kernel (x is one-hot) ---------
    ids = jnp.zeros((Tp, Bp), jnp.int32).at[:T, :B].set(inputs.T.astype(jnp.int32))
    x_all = emb[ids]                                         # (Tp, Bp, Hp) f32

    if state is None:           # nn.RNN semantics: state=None -> zeros
        h0 = jnp.zeros((Bp, Hp), f32)
    else:
        h0 = jnp.zeros((Bp, Hp), f32).at[:B, :H].set(state[0].astype(f32))

    # ---------------- recurrence: time-chunked grid, resident h scratch -----
    kernel = functools.partial(rnn_recurrence_kernel, tc=tc,
                               t_real=(T if Tp != T else None))
    h_all, h_last = pl.pallas_call(
        kernel,
        out_shape=(jax.ShapeDtypeStruct((Tp, Bp, Hp), jnp.bfloat16),
                   jax.ShapeDtypeStruct((Bp, Hp), f32)),
        grid_spec=pltpu.PrefetchScalarGridSpec(
            num_scalar_prefetch=0,
            grid=(Tp // tc,),
            in_specs=[
                pl.BlockSpec((tc, Bp, Hp), lambda i: (i, 0, 0)),   # x chunk
                pl.BlockSpec((Hp, Hp), lambda i: (0, 0)),          # W_hh^T (bf16)
                pl.BlockSpec((1, Hp), lambda i: (0, 0)),           # b_ih + b_hh
                pl.BlockSpec((Bp, Hp), lambda i: (0, 0)),          # h0
            ],
            out_specs=[pl.BlockSpec((tc, Bp, Hp), lambda i: (i, 0, 0)),  # h_all
                       pl.BlockSpec((Bp, Hp), lambda i: (0, 0))],        # h_last
            scratch_shapes=[pltpu.VMEM((Bp, Hp), f32)],
        ),
        compiler_params=pltpu.CompilerParams(
            dimension_semantics=("arbitrary",)),               # sequential in time
    )(x_all, whh_t, b_rnn, h0)

    # final RNN state, (1, B, H) like nn.RNN's (num_layers, B, H), full f32
    state_out = h_last[:B, :H][None]

    # ---------------- dense head: one batched (M, Hp) @ (Hp, Vp) ------------
    M = Tp * Bp
    if head_tile is None:
        # even number of row tiles (balances v7x's two TensorCores), each a
        # multiple of 8 sublanes; capped so the f32 output tile stays modest.
        n_tiles = max(2, 2 * pl.cdiv(M, 1024))
        head_tile = _round_up(pl.cdiv(M, n_tiles), 8)
    Mp = _round_up(M, head_tile)
    h2d = h_all.reshape(M, Hp)                               # bf16 rows
    if Mp != M:
        h2d = jnp.pad(h2d, ((0, Mp - M), (0, 0)))

    # NOTE: for production vocab sizes, N-tile Vp (extra grid axis) and set
    # pipeline_mode=pl.Buffered(1) on the constant W_d^T block to respect
    # v7x's 64 MiB VMEM; unnecessary at Vp ~ 1.2K.
    y_pad = pl.pallas_call(
        dense_head_kernel,
        out_shape=jax.ShapeDtypeStruct((Mp, Vp), f32),
        grid_spec=pltpu.PrefetchScalarGridSpec(
            num_scalar_prefetch=0,
            grid=(Mp // head_tile,),
            in_specs=[
                pl.BlockSpec((head_tile, Hp), lambda i: (i, 0)),    # H rows tile
                pl.BlockSpec((Hp, Vp), lambda i: (0, 0)),           # W_d^T (bf16)
                pl.BlockSpec((1, Vp), lambda i: (0, 0)),            # b_d
            ],
            out_specs=pl.BlockSpec((head_tile, Vp), lambda i: (i, 0)),
        ),
        compiler_params=pltpu.CompilerParams(
            dimension_semantics=("parallel",)),          # v7x: split across TCs
    )(h2d, wd_t, bd)

    # un-pad: (Mp, Vp) -> (T, B, V) -> (T*B, V), matching dense(Y.view(-1, H))
    output = y_pad[:M, :V].reshape(Tp, Bp, V)[:T, :B, :].reshape(T * B, V)
    return output, state_out


def rnn_model_reference(inputs, params, state=None, compute_dtype=jnp.bfloat16):
    """Pure-JAX reference using the same (bf16 matmul, f32 accumulate) numerics."""
    w_ih, w_hh, b_ih, b_hh, w_d, b_d = params
    H, V = w_ih.shape
    B, T = inputs.shape
    emb = w_ih.T.astype(jnp.float32)                     # one_hot(x) @ W_ih^T == emb[id]
    whh = w_hh.T.astype(compute_dtype)
    wd = w_d.T.astype(compute_dtype)
    b = (b_ih + b_hh).astype(jnp.float32)

    h0 = (jnp.zeros((B, H), jnp.float32) if state is None
          else state[0].astype(jnp.float32))

    def step(h, ids_t):
        x = emb[ids_t]                                   # (B, H)
        hh = jnp.dot(h.astype(compute_dtype), whh,
                     preferred_element_type=jnp.float32)
        h_new = jnp.tanh(x + hh + b[None, :])
        return h_new, h_new

    h_last, hs = lax.scan(step, h0, inputs.T)            # hs: (T, B, H)
    logits = (jnp.dot(hs.reshape(T * B, H).astype(compute_dtype), wd,
                      preferred_element_type=jnp.float32)
              + b_d[None, :].astype(jnp.float32))
    return logits, h_last[None]


def init_params(key, vocab_size, num_hiddens):
    """Uniform(-1/sqrt(H), 1/sqrt(H)) init mirroring nn.RNN / nn.Linear."""
    k = jax.random.split(key, 6)
    bound = 1.0 / (num_hiddens ** 0.5)
    u = lambda kk, shape: jax.random.uniform(kk, shape, jnp.float32,
                                             minval=-bound, maxval=bound)
    w_ih = u(k[0], (num_hiddens, vocab_size))   # nn.RNN weight_ih_l0
    w_hh = u(k[1], (num_hiddens, num_hiddens))  # nn.RNN weight_hh_l0
    b_ih = u(k[2], (num_hiddens,))
    b_hh = u(k[3], (num_hiddens,))
    w_d = u(k[4], (vocab_size, num_hiddens))    # nn.Linear(H, vocab)
    b_d = u(k[5], (vocab_size,))
    return (w_ih, w_hh, b_ih, b_hh, w_d, b_d)


if __name__ == "__main__":
    batch_size = 2
    num_steps = 35       # matches the PyTorch demo
    num_hiddens = 256    # matches the PyTorch demo
    vocab_size = 1027    # d2l-style vocab; deliberately NOT a multiple of 128

    key = jax.random.PRNGKey(0)
    k_in, k_p = jax.random.split(key)
    inputs = jax.random.randint(k_in, (batch_size, num_steps), 0, vocab_size,
                                dtype=jnp.int32)
    params = init_params(k_p, vocab_size, num_hiddens)

    output, state = jax.jit(rnn_model_forward)(inputs, params)
    jax.block_until_ready((output, state))

    assert output.shape == (num_steps * batch_size, vocab_size)
    assert state.shape == (1, batch_size, num_hiddens)

    # correctness check against a pure-JAX reference with matching numerics
    ref_out, ref_state = jax.jit(rnn_model_reference)(inputs, params)
    jax.block_until_ready((ref_out, ref_state))
    assert jnp.allclose(output, ref_out, atol=2e-2, rtol=2e-2), (
        "max |diff| = %f" % float(jnp.max(jnp.abs(output - ref_out))))
    assert jnp.allclose(state, ref_state, atol=2e-2, rtol=2e-2)

    print("KERNEL_OK")
</pallas_src>

<mosaic_0001>
module attributes {stable_mosaic.version = 11 : i64} {
  func.func @rnn_recurrence_kernel(%arg0: i32, %arg1: memref<7x8x256xf32, #tpu.memory_space<vmem>>, %arg2: memref<256x256xbf16, #tpu.memory_space<vmem>>, %arg3: memref<1x256xf32, #tpu.memory_space<vmem>>, %arg4: memref<8x256xf32, #tpu.memory_space<vmem>>, %arg5: memref<7x8x256xbf16, #tpu.memory_space<vmem>>, %arg6: memref<8x256xf32, #tpu.memory_space<vmem>>, %arg7: memref<8x256xf32, #tpu.memory_space<vmem>>) attributes {dimension_semantics = [#tpu.dimension_semantics<arbitrary>], iteration_bounds = array<i64: 5>, scalar_prefetch = 0 : i64, scratch_operands = 1 : i64, tpu.core_type = #tpu.core_type<tc>, window_params = [{transform_indices = @transform_0, window_bounds = array<i64: 7, 8, 256>}, {pipeline_mode = #tpu.pipeline_mode<synchronous>, transform_indices = @transform_1, window_bounds = array<i64: 256, 256>}, {pipeline_mode = #tpu.pipeline_mode<synchronous>, transform_indices = @transform_2, window_bounds = array<i64: 1, 256>}, {pipeline_mode = #tpu.pipeline_mode<synchronous>, transform_indices = @transform_3, window_bounds = array<i64: 8, 256>}, {transform_indices = @transform_4, window_bounds = array<i64: 7, 8, 256>}, {pipeline_mode = #tpu.pipeline_mode<synchronous>, transform_indices = @transform_5, window_bounds = array<i64: 8, 256>}]} {
    %c0_i32 = arith.constant 0 : i32
    %0 = arith.cmpi eq, %arg0, %c0_i32 : i32
    %1 = arith.extui %0 : i1 to i32
    %c0_i32_0 = arith.constant 0 : i32
    %2 = arith.cmpi ne, %1, %c0_i32_0 : i32
    scf.if %2 {
      %c0_83 = arith.constant 0 : index
      %c0_84 = arith.constant 0 : index
      %125 = vector.load %arg4[%c0_83, %c0_84] : memref<8x256xf32, #tpu.memory_space<vmem>>, vector<8x256xf32>
      %c0_85 = arith.constant 0 : index
      %c0_86 = arith.constant 0 : index
      %126 = vector.load %arg7[%c0_85, %c0_86] : memref<8x256xf32, #tpu.memory_space<vmem>>, vector<8x256xf32>
      tpu.vector_store %arg7[%c0_85, %c0_86], %125 {strides = array<i32>} : memref<8x256xf32, #tpu.memory_space<vmem>>, vector<8x256xf32>,
    } else {
    }
    %c0 = arith.constant 0 : index
    %c0_1 = arith.constant 0 : index
    %3 = vector.load %arg3[%c0, %c0_1] : memref<1x256xf32, #tpu.memory_space<vmem>>, vector<1x256xf32>
    %c0_i32_2 = arith.constant 0 : i32
    %c0_3 = arith.constant 0 : index
    %c0_4 = arith.constant 0 : index
    %4 = vector.load %arg7[%c0_3, %c0_4] : memref<8x256xf32, #tpu.memory_space<vmem>>, vector<8x256xf32>
    %5 = arith.truncf %4 : vector<8x256xf32> to vector<8x256xbf16>
    %c0_5 = arith.constant 0 : index
    %c0_6 = arith.constant 0 : index
    %6 = vector.load %arg2[%c0_5, %c0_6] : memref<256x256xbf16, #tpu.memory_space<vmem>>, vector<256x256xbf16>
    %cst = arith.constant dense<0.000000e+00> : vector<8x256xf32>
    %7 = tpu.matmul %5, %6, %cst {dimension_numbers = #tpu.dot_dimension_numbers<[1], [0], [0], [1], [0, 0, 1, 1], [], []>} : vector<8x256xbf16>, vector<256x256xbf16>, vector<8x256xf32> -> vector<8x256xf32>
    %8 = arith.index_cast %c0_i32_2 : i32 to index
    %c0_7 = arith.constant 0 : index
    %c0_8 = arith.constant 0 : index
    %9 = vector.load %arg1[%8, %c0_7, %c0_8] : memref<7x8x256xf32, #tpu.memory_space<vmem>>, vector<1x8x256xf32>
    %10 = vector.shape_cast %9 : vector<1x8x256xf32> to vector<8x256xf32>
    %11 = arith.addf %10, %7 : vector<8x256xf32>
    %12 = vector.broadcast %3 : vector<1x256xf32> to vector<8x256xf32>
    %13 = arith.addf %11, %12 : vector<8x256xf32>
    %14 = math.tanh %13 : vector<8x256xf32>
    %c0_9 = arith.constant 0 : index
    %c0_10 = arith.constant 0 : index
    %15 = vector.load %arg7[%c0_9, %c0_10] : memref<8x256xf32, #tpu.memory_space<vmem>>, vector<8x256xf32>
    tpu.vector_store %arg7[%c0_9, %c0_10], %14 {strides = array<i32>} : memref<8x256xf32, #tpu.memory_space<vmem>>, vector<8x256xf32>,
    %16 = arith.truncf %14 : vector<8x256xf32> to vector<8x256xbf16>
    %17 = arith.index_cast %c0_i32_2 : i32 to index
    %c0_11 = arith.constant 0 : index
    %c0_12 = arith.constant 0 : index
    %18 = vector.load %arg5[%17, %c0_11, %c0_12] : memref<7x8x256xbf16, #tpu.memory_space<vmem>>, vector<1x8x256xbf16>
    %19 = vector.shape_cast %18 : vector<1x8x256xbf16> to vector<8x256xbf16>
    %20 = vector.shape_cast %16 : vector<8x256xbf16> to vector<1x8x256xbf16>
    tpu.vector_store %arg5[%17, %c0_11, %c0_12], %20 {strides = array<i32>} : memref<7x8x256xbf16, #tpu.memory_space<vmem>>, vector<1x8x256xbf16>,
    %c1_i32 = arith.constant 1 : i32
    %c0_13 = arith.constant 0 : index
    %c0_14 = arith.constant 0 : index
    %21 = vector.load %arg7[%c0_13, %c0_14] : memref<8x256xf32, #tpu.memory_space<vmem>>, vector<8x256xf32>
    %22 = arith.truncf %21 : vector<8x256xf32> to vector<8x256xbf16>
    %c0_15 = arith.constant 0 : index
    %c0_16 = arith.constant 0 : index
    %23 = vector.load %arg2[%c0_15, %c0_16] : memref<256x256xbf16, #tpu.memory_space<vmem>>, vector<256x256xbf16>
    %cst_17 = arith.constant dense<0.000000e+00> : vector<8x256xf32>
    %24 = tpu.matmul %22, %23, %cst_17 {dimension_numbers = #tpu.dot_dimension_numbers<[1], [0], [0], [1], [0, 0, 1, 1], [], []>} : vector<8x256xbf16>, vector<256x256xbf16>, vector<8x256xf32> -> vector<8x256xf32>
    %25 = arith.index_cast %c1_i32 : i32 to index
    %c0_18 = arith.constant 0 : index
    %c0_19 = arith.constant 0 : index
    %26 = vector.load %arg1[%25, %c0_18, %c0_19] : memref<7x8x256xf32, #tpu.memory_space<vmem>>, vector<1x8x256xf32>
    %27 = vector.shape_cast %26 : vector<1x8x256xf32> to vector<8x256xf32>
    %28 = arith.addf %27, %24 : vector<8x256xf32>
    %29 = vector.broadcast %3 : vector<1x256xf32> to vector<8x256xf32>
    %30 = arith.addf %28, %29 : vector<8x256xf32>
    %31 = math.tanh %30 : vector<8x256xf32>
    %c0_20 = arith.constant 0 : index
    %c0_21 = arith.constant 0 : index
    %32 = vector.load %arg7[%c0_20, %c0_21] : memref<8x256xf32, #tpu.memory_space<vmem>>, vector<8x256xf32>
    tpu.vector_store %arg7[%c0_20, %c0_21], %31 {strides = array<i32>} : memref<8x256xf32, #tpu.memory_space<vmem>>, vector<8x256xf32>,
    %33 = arith.truncf %31 : vector<8x256xf32> to vector<8x256xbf16>
    %34 = arith.index_cast %c1_i32 : i32 to index
    %c0_22 = arith.constant 0 : index
    %c0_23 = arith.constant 0 : index
    %35 = vector.load %arg5[%34, %c0_22, %c0_23] : memref<7x8x256xbf16, #tpu.memory_space<vmem>>, vector<1x8x256xbf16>
    %36 = vector.shape_cast %35 : vector<1x8x256xbf16> to vector<8x256xbf16>
    %37 = vector.shape_cast %33 : vector<8x256xbf16> to vector<1x8x256xbf16>
    tpu.vector_store %arg5[%34, %c0_22, %c0_23], %37 {strides = array<i32>} : memref<7x8x256xbf16, #tpu.memory_space<vmem>>, vector<1x8x256xbf16>,
    %c2_i32 = arith.constant 2 : i32
    %c0_24 = arith.constant 0 : index
    %c0_25 = arith.constant 0 : index
    %38 = vector.load %arg7[%c0_24, %c0_25] : memref<8x256xf32, #tpu.memory_space<vmem>>, vector<8x256xf32>
    %39 = arith.truncf %38 : vector<8x256xf32> to vector<8x256xbf16>
    %c0_26 = arith.constant 0 : index
    %c0_27 = arith.constant 0 : index
    %40 = vector.load %arg2[%c0_26, %c0_27] : memref<256x256xbf16, #tpu.memory_space<vmem>>, vector<256x256xbf16>
    %cst_28 = arith.constant dense<0.000000e+00> : vector<8x256xf32>
    %41 = tpu.matmul %39, %40, %cst_28 {dimension_numbers = #tpu.dot_dimension_numbers<[1], [0], [0], [1], [0, 0, 1, 1], [], []>} : vector<8x256xbf16>, vector<256x256xbf16>, vector<8x256xf32> -> vector<8x256xf32>
    %42 = arith.index_cast %c2_i32 : i32 to index
    %c0_29 = arith.constant 0 : index
    %c0_30 = arith.constant 0 : index
    %43 = vector.load %arg1[%42, %c0_29, %c0_30] : memref<7x8x256xf32, #tpu.memory_space<vmem>>, vector<1x8x256xf32>
    %44 = vector.shape_cast %43 : vector<1x8x256xf32> to vector<8x256xf32>
    %45 = arith.addf %44, %41 : vector<8x256xf32>
    %46 = vector.broadcast %3 : vector<1x256xf32> to vector<8x256xf32>
    %47 = arith.addf %45, %46 : vector<8x256xf32>
    %48 = math.tanh %47 : vector<8x256xf32>
    %c0_31 = arith.constant 0 : index
    %c0_32 = arith.constant 0 : index
    %49 = vector.load %arg7[%c0_31, %c0_32] : memref<8x256xf32, #tpu.memory_space<vmem>>, vector<8x256xf32>
    tpu.vector_store %arg7[%c0_31, %c0_32], %48 {strides = array<i32>} : memref<8x256xf32, #tpu.memory_space<vmem>>, vector<8x256xf32>,
    %50 = arith.truncf %48 : vector<8x256xf32> to vector<8x256xbf16>
    %51 = arith.index_cast %c2_i32 : i32 to index
    %c0_33 = arith.constant 0 : index
    %c0_34 = arith.constant 0 : index
    %52 = vector.load %arg5[%51, %c0_33, %c0_34] : memref<7x8x256xbf16, #tpu.memory_space<vmem>>, vector<1x8x256xbf16>
    %53 = vector.shape_cast %52 : vector<1x8x256xbf16> to vector<8x256xbf16>
    %54 = vector.shape_cast %50 : vector<8x256xbf16> to vector<1x8x256xbf16>
    tpu.vector_store %arg5[%51, %c0_33, %c0_34], %54 {strides = array<i32>} : memref<7x8x256xbf16, #tpu.memory_space<vmem>>, vector<1x8x256xbf16>,
    %c3_i32 = arith.constant 3 : i32
    %c0_35 = arith.constant 0 : index
    %c0_36 = arith.constant 0 : index
    %55 = vector.load %arg7[%c0_35, %c0_36] : memref<8x256xf32, #tpu.memory_space<vmem>>, vector<8x256xf32>
    %56 = arith.truncf %55 : vector<8x256xf32> to vector<8x256xbf16>
    %c0_37 = arith.constant 0 : index
    %c0_38 = arith.constant 0 : index
    %57 = vector.load %arg2[%c0_37, %c0_38] : memref<256x256xbf16, #tpu.memory_space<vmem>>, vector<256x256xbf16>
    %cst_39 = arith.constant dense<0.000000e+00> : vector<8x256xf32>
    %58 = tpu.matmul %56, %57, %cst_39 {dimension_numbers = #tpu.dot_dimension_numbers<[1], [0], [0], [1], [0, 0, 1, 1], [], []>} : vector<8x256xbf16>, vector<256x256xbf16>, vector<8x256xf32> -> vector<8x256xf32>
    %59 = arith.index_cast %c3_i32 : i32 to index
    %c0_40 = arith.constant 0 : index
    %c0_41 = arith.constant 0 : index
    %60 = vector.load %arg1[%59, %c0_40, %c0_41] : memref<7x8x256xf32, #tpu.memory_space<vmem>>, vector<1x8x256xf32>
    %61 = vector.shape_cast %60 : vector<1x8x256xf32> to vector<8x256xf32>
    %62 = arith.addf %61, %58 : vector<8x256xf32>
    %63 = vector.broadcast %3 : vector<1x256xf32> to vector<8x256xf32>
    %64 = arith.addf %62, %63 : vector<8x256xf32>
    %65 = math.tanh %64 : vector<8x256xf32>
    %c0_42 = arith.constant 0 : index
    %c0_43 = arith.constant 0 : index
    %66 = vector.load %arg7[%c0_42, %c0_43] : memref<8x256xf32, #tpu.memory_space<vmem>>, vector<8x256xf32>
    tpu.vector_store %arg7[%c0_42, %c0_43], %65 {strides = array<i32>} : memref<8x256xf32, #tpu.memory_space<vmem>>, vector<8x256xf32>,
    %67 = arith.truncf %65 : vector<8x256xf32> to vector<8x256xbf16>
    %68 = arith.index_cast %c3_i32 : i32 to index
    %c0_44 = arith.constant 0 : index
    %c0_45 = arith.constant 0 : index
    %69 = vector.load %arg5[%68, %c0_44, %c0_45] : memref<7x8x256xbf16, #tpu.memory_space<vmem>>, vector<1x8x256xbf16>
    %70 = vector.shape_cast %69 : vector<1x8x256xbf16> to vector<8x256xbf16>
    %71 = vector.shape_cast %67 : vector<8x256xbf16> to vector<1x8x256xbf16>
    tpu.vector_store %arg5[%68, %c0_44, %c0_45], %71 {strides = array<i32>} : memref<7x8x256xbf16, #tpu.memory_space<vmem>>, vector<1x8x256xbf16>,
    %c4_i32 = arith.constant 4 : i32
    %c0_46 = arith.constant 0 : index
    %c0_47 = arith.constant 0 : index
    %72 = vector.load %arg7[%c0_46, %c0_47] : memref<8x256xf32, #tpu.memory_space<vmem>>, vector<8x256xf32>
    %73 = arith.truncf %72 : vector<8x256xf32> to vector<8x256xbf16>
    %c0_48 = arith.constant 0 : index
    %c0_49 = arith.constant 0 : index
    %74 = vector.load %arg2[%c0_48, %c0_49] : memref<256x256xbf16, #tpu.memory_space<vmem>>, vector<256x256xbf16>
    %cst_50 = arith.constant dense<0.000000e+00> : vector<8x256xf32>
    %75 = tpu.matmul %73, %74, %cst_50 {dimension_numbers = #tpu.dot_dimension_numbers<[1], [0], [0], [1], [0, 0, 1, 1], [], []>} : vector<8x256xbf16>, vector<256x256xbf16>, vector<8x256xf32> -> vector<8x256xf32>
    %76 = arith.index_cast %c4_i32 : i32 to index
    %c0_51 = arith.constant 0 : index
    %c0_52 = arith.constant 0 : index
    %77 = vector.load %arg1[%76, %c0_51, %c0_52] : memref<7x8x256xf32, #tpu.memory_space<vmem>>, vector<1x8x256xf32>
    %78 = vector.shape_cast %77 : vector<1x8x256xf32> to vector<8x256xf32>
    %79 = arith.addf %78, %75 : vector<8x256xf32>
    %80 = vector.broadcast %3 : vector<1x256xf32> to vector<8x256xf32>
    %81 = arith.addf %79, %80 : vector<8x256xf32>
    %82 = math.tanh %81 : vector<8x256xf32>
    %c0_53 = arith.constant 0 : index
    %c0_54 = arith.constant 0 : index
    %83 = vector.load %arg7[%c0_53, %c0_54] : memref<8x256xf32, #tpu.memory_space<vmem>>, vector<8x256xf32>
    tpu.vector_store %arg7[%c0_53, %c0_54], %82 {strides = array<i32>} : memref<8x256xf32, #tpu.memory_space<vmem>>, vector<8x256xf32>,
    %84 = arith.truncf %82 : vector<8x256xf32> to vector<8x256xbf16>
    %85 = arith.index_cast %c4_i32 : i32 to index
    %c0_55 = arith.constant 0 : index
    %c0_56 = arith.constant 0 : index
    %86 = vector.load %arg5[%85, %c0_55, %c0_56] : memref<7x8x256xbf16, #tpu.memory_space<vmem>>, vector<1x8x256xbf16>
    %87 = vector.shape_cast %86 : vector<1x8x256xbf16> to vector<8x256xbf16>
    %88 = vector.shape_cast %84 : vector<8x256xbf16> to vector<1x8x256xbf16>
    tpu.vector_store %arg5[%85, %c0_55, %c0_56], %88 {strides = array<i32>} : memref<7x8x256xbf16, #tpu.memory_space<vmem>>, vector<1x8x256xbf16>,
    %c5_i32 = arith.constant 5 : i32
    %c0_57 = arith.constant 0 : index
    %c0_58 = arith.constant 0 : index
    %89 = vector.load %arg7[%c0_57, %c0_58] : memref<8x256xf32, #tpu.memory_space<vmem>>, vector<8x256xf32>
    %90 = arith.truncf %89 : vector<8x256xf32> to vector<8x256xbf16>
    %c0_59 = arith.constant 0 : index
    %c0_60 = arith.constant 0 : index
    %91 = vector.load %arg2[%c0_59, %c0_60] : memref<256x256xbf16, #tpu.memory_space<vmem>>, vector<256x256xbf16>
    %cst_61 = arith.constant dense<0.000000e+00> : vector<8x256xf32>
    %92 = tpu.matmul %90, %91, %cst_61 {dimension_numbers = #tpu.dot_dimension_numbers<[1], [0], [0], [1], [0, 0, 1, 1], [], []>} : vector<8x256xbf16>, vector<256x256xbf16>, vector<8x256xf32> -> vector<8x256xf32>
    %93 = arith.index_cast %c5_i32 : i32 to index
    %c0_62 = arith.constant 0 : index
    %c0_63 = arith.constant 0 : index
    %94 = vector.load %arg1[%93, %c0_62, %c0_63] : memref<7x8x256xf32, #tpu.memory_space<vmem>>, vector<1x8x256xf32>
    %95 = vector.shape_cast %94 : vector<1x8x256xf32> to vector<8x256xf32>
    %96 = arith.addf %95, %92 : vector<8x256xf32>
    %97 = vector.broadcast %3 : vector<1x256xf32> to vector<8x256xf32>
    %98 = arith.addf %96, %97 : vector<8x256xf32>
    %99 = math.tanh %98 : vector<8x256xf32>
    %c0_64 = arith.constant 0 : index
    %c0_65 = arith.constant 0 : index
    %100 = vector.load %arg7[%c0_64, %c0_65] : memref<8x256xf32, #tpu.memory_space<vmem>>, vector<8x256xf32>
    tpu.vector_store %arg7[%c0_64, %c0_65], %99 {strides = array<i32>} : memref<8x256xf32, #tpu.memory_space<vmem>>, vector<8x256xf32>,
    %101 = arith.truncf %99 : vector<8x256xf32> to vector<8x256xbf16>
    %102 = arith.index_cast %c5_i32 : i32 to index
    %c0_66 = arith.constant 0 : index
    %c0_67 = arith.constant 0 : index
    %103 = vector.load %arg5[%102, %c0_66, %c0_67] : memref<7x8x256xbf16, #tpu.memory_space<vmem>>, vector<1x8x256xbf16>
    %104 = vector.shape_cast %103 : vector<1x8x256xbf16> to vector<8x256xbf16>
    %105 = vector.shape_cast %101 : vector<8x256xbf16> to vector<1x8x256xbf16>
    tpu.vector_store %arg5[%102, %c0_66, %c0_67], %105 {strides = array<i32>} : memref<7x8x256xbf16, #tpu.memory_space<vmem>>, vector<1x8x256xbf16>,
    %c6_i32 = arith.constant 6 : i32
    %c0_68 = arith.constant 0 : index
    %c0_69 = arith.constant 0 : index
    %106 = vector.load %arg7[%c0_68, %c0_69] : memref<8x256xf32, #tpu.memory_space<vmem>>, vector<8x256xf32>
    %107 = arith.truncf %106 : vector<8x256xf32> to vector<8x256xbf16>
    %c0_70 = arith.constant 0 : index
    %c0_71 = arith.constant 0 : index
    %108 = vector.load %arg2[%c0_70, %c0_71] : memref<256x256xbf16, #tpu.memory_space<vmem>>, vector<256x256xbf16>
    %cst_72 = arith.constant dense<0.000000e+00> : vector<8x256xf32>
    %109 = tpu.matmul %107, %108, %cst_72 {dimension_numbers = #tpu.dot_dimension_numbers<[1], [0], [0], [1], [0, 0, 1, 1], [], []>} : vector<8x256xbf16>, vector<256x256xbf16>, vector<8x256xf32> -> vector<8x256xf32>
    %110 = arith.index_cast %c6_i32 : i32 to index
    %c0_73 = arith.constant 0 : index
    %c0_74 = arith.constant 0 : index
    %111 = vector.load %arg1[%110, %c0_73, %c0_74] : memref<7x8x256xf32, #tpu.memory_space<vmem>>, vector<1x8x256xf32>
    %112 = vector.shape_cast %111 : vector<1x8x256xf32> to vector<8x256xf32>
    %113 = arith.addf %112, %109 : vector<8x256xf32>
    %114 = vector.broadcast %3 : vector<1x256xf32> to vector<8x256xf32>
    %115 = arith.addf %113, %114 : vector<8x256xf32>
    %116 = math.tanh %115 : vector<8x256xf32>
    %c0_75 = arith.constant 0 : index
    %c0_76 = arith.constant 0 : index
    %117 = vector.load %arg7[%c0_75, %c0_76] : memref<8x256xf32, #tpu.memory_space<vmem>>, vector<8x256xf32>
    tpu.vector_store %arg7[%c0_75, %c0_76], %116 {strides = array<i32>} : memref<8x256xf32, #tpu.memory_space<vmem>>, vector<8x256xf32>,
    %118 = arith.truncf %116 : vector<8x256xf32> to vector<8x256xbf16>
    %119 = arith.index_cast %c6_i32 : i32 to index
    %c0_77 = arith.constant 0 : index
    %c0_78 = arith.constant 0 : index
    %120 = vector.load %arg5[%119, %c0_77, %c0_78] : memref<7x8x256xbf16, #tpu.memory_space<vmem>>, vector<1x8x256xbf16>
    %121 = vector.shape_cast %120 : vector<1x8x256xbf16> to vector<8x256xbf16>
    %122 = vector.shape_cast %118 : vector<8x256xbf16> to vector<1x8x256xbf16>
    tpu.vector_store %arg5[%119, %c0_77, %c0_78], %122 {strides = array<i32>} : memref<7x8x256xbf16, #tpu.memory_space<vmem>>, vector<1x8x256xbf16>,
    %c7_i32 = arith.constant 7 : i32
    %c0_79 = arith.constant 0 : index
    %c0_80 = arith.constant 0 : index
    %123 = vector.load %arg7[%c0_79, %c0_80] : memref<8x256xf32, #tpu.memory_space<vmem>>, vector<8x256xf32>
    %c0_81 = arith.constant 0 : index
    %c0_82 = arith.constant 0 : index
    %124 = vector.load %arg6[%c0_81, %c0_82] : memref<8x256xf32, #tpu.memory_space<vmem>>, vector<8x256xf32>
    tpu.vector_store %arg6[%c0_81, %c0_82], %123 {strides = array<i32>} : memref<8x256xf32, #tpu.memory_space<vmem>>, vector<8x256xf32>,
    return
  }
  func.func @transform_0(%arg0: i32) -> (i32, i32, i32) {
    %c0_i32 = arith.constant 0 : i32
    %c0_i32_0 = arith.constant 0 : i32
    %c0_i32_1 = arith.constant 0 : i32
    return %arg0, %c0_i32, %c0_i32_0 : i32, i32, i32
  }
  func.func @transform_1(%arg0: i32) -> (i32, i32) {
    %c0_i32 = arith.constant 0 : i32
    %c0_i32_0 = arith.constant 0 : i32
    %c0_i32_1 = arith.constant 0 : i32
    return %c0_i32, %c0_i32_0 : i32, i32
  }
  func.func @transform_2(%arg0: i32) -> (i32, i32) {
    %c0_i32 = arith.constant 0 : i32
    %c0_i32_0 = arith.constant 0 : i32
    %c0_i32_1 = arith.constant 0 : i32
    return %c0_i32, %c0_i32_0 : i32, i32
  }
  func.func @transform_3(%arg0: i32) -> (i32, i32) {
    %c0_i32 = arith.constant 0 : i32
    %c0_i32_0 = arith.constant 0 : i32
    %c0_i32_1 = arith.constant 0 : i32
    return %c0_i32, %c0_i32_0 : i32, i32
  }
  func.func @transform_4(%arg0: i32) -> (i32, i32, i32) {
    %c0_i32 = arith.constant 0 : i32
    %c0_i32_0 = arith.constant 0 : i32
    %c0_i32_1 = arith.constant 0 : i32
    return %arg0, %c0_i32, %c0_i32_0 : i32, i32, i32
  }
  func.func @transform_5(%arg0: i32) -> (i32, i32) {
    %c0_i32 = arith.constant 0 : i32
    %c0_i32_0 = arith.constant 0 : i32
    %c0_i32_1 = arith.constant 0 : i32
    return %c0_i32, %c0_i32_0 : i32, i32
  }
}

module attributes {stable_mosaic.version = 11 : i64} {
  func.func @dense_head_kernel(%arg0: i32, %arg1: memref<144x256xbf16, #tpu.memory_space<vmem>>, %arg2: memref<256x1152xbf16, #tpu.memory_space<vmem>>, %arg3: memref<1x1152xf32, #tpu.memory_space<vmem>>, %arg4: memref<144x1152xf32, #tpu.memory_space<vmem>>) attributes {dimension_semantics = [#tpu.dimension_semantics<parallel>], iteration_bounds = array<i64: 2>, scalar_prefetch = 0 : i64, scratch_operands = 0 : i64, tpu.core_type = #tpu.core_type<tc>, window_params = [{transform_indices = @transform_0, window_bounds = array<i64: 144, 256>}, {pipeline_mode = #tpu.pipeline_mode<synchronous>, transform_indices = @transform_1, window_bounds = array<i64: 256, 1152>}, {pipeline_mode = #tpu.pipeline_mode<synchronous>, transform_indices = @transform_2, window_bounds = array<i64: 1, 1152>}, {transform_indices = @transform_3, window_bounds = array<i64: 144, 1152>}]} {
    %c0 = arith.constant 0 : index
    %c0_0 = arith.constant 0 : index
    %0 = vector.load %arg1[%c0, %c0_0] : memref<144x256xbf16, #tpu.memory_space<vmem>>, vector<144x256xbf16>
    %c0_1 = arith.constant 0 : index
    %c0_2 = arith.constant 0 : index
    %1 = vector.load %arg2[%c0_1, %c0_2] : memref<256x1152xbf16, #tpu.memory_space<vmem>>, vector<256x1152xbf16>
    %cst = arith.constant dense<0.000000e+00> : vector<144x1152xf32>
    %2 = tpu.matmul %0, %1, %cst {dimension_numbers = #tpu.dot_dimension_numbers<[1], [0], [0], [1], [0, 0, 1, 1], [], []>} : vector<144x256xbf16>, vector<256x1152xbf16>, vector<144x1152xf32> -> vector<144x1152xf32>
    %c0_3 = arith.constant 0 : index
    %c0_4 = arith.constant 0 : index
    %3 = vector.load %arg3[%c0_3, %c0_4] : memref<1x1152xf32, #tpu.memory_space<vmem>>, vector<1x1152xf32>
    %4 = vector.broadcast %3 : vector<1x1152xf32> to vector<144x1152xf32>
    %5 = arith.addf %2, %4 : vector<144x1152xf32>
    %c0_5 = arith.constant 0 : index
    %c0_6 = arith.constant 0 : index
    %6 = vector.load %arg4[%c0_5, %c0_6] : memref<144x1152xf32, #tpu.memory_space<vmem>>, vector<144x1152xf32>
    tpu.vector_store %arg4[%c0_5, %c0_6], %5 {strides = array<i32>} : memref<144x1152xf32, #tpu.memory_space<vmem>>, vector<144x1152xf32>,
    return
  }
  func.func @transform_0(%arg0: i32) -> (i32, i32) {
    %c0_i32 = arith.constant 0 : i32
    %c0_i32_0 = arith.constant 0 : i32
    return %arg0, %c0_i32 : i32, i32
  }
  func.func @transform_1(%arg0: i32) -> (i32, i32) {
    %c0_i32 = arith.constant 0 : i32
    %c0_i32_0 = arith.constant 0 : i32
    %c0_i32_1 = arith.constant 0 : i32
    return %c0_i32, %c0_i32_0 : i32, i32
  }
  func.func @transform_2(%arg0: i32) -> (i32, i32) {
    %c0_i32 = arith.constant 0 : i32
    %c0_i32_0 = arith.constant 0 : i32
    %c0_i32_1 = arith.constant 0 : i32
    return %c0_i32, %c0_i32_0 : i32, i32
  }
  func.func @transform_3(%arg0: i32) -> (i32, i32) {
    %c0_i32 = arith.constant 0 : i32
    %c0_i32_0 = arith.constant 0 : i32
    return %arg0, %c0_i32 : i32, i32
  }
}

</mosaic_0001>

<bundles_post_ra>
// kernel: rnn_model_forward.2
= control target key start
LH: loop header
LB: loop body
LE: loop exit
PB: predicated region body
PF: predicated region fallthrough
CT: control target
= control target key end

     0   :  { %s2563_s18 = smov 0   ;;  %s3054_s0 = inlined_call_operand.vmem [shape: f32[35,8,256], index: 0, kind: input, shape index: {}]   ;;  %s3055_s1 = inlined_call_operand.vmem [shape: bf16[256,256], index: 1, kind: input, shape index: {}]   ;;  %s3056_s2 = inlined_call_operand.vmem [shape: f32[1,256], index: 2, kind: input, shape index: {}]   ;;  %s3057_s3 = inlined_call_operand.vmem [shape: f32[8,256], index: 3, kind: input, shape index: {}]   ;;  %s3058_s4 = inlined_call_operand.vmem [shape: bf16[35,8,256], index: 4, kind: output, shape index: {0}]   ;;  %s3059_s5 = inlined_call_operand.vmem [shape: f32[8,256], index: 5, kind: output, shape index: {1}]  }
   0x1 LB: > { %s2123_s19 = sadd.s32 4294967295, %s2531_s18   ;;  %p2127_p0 = scmp.ge.s32.totalorder %s2531_s18, 1  ;;  %s2531_s18 = sphi %s2563_s18, %s16_s18  }
   0x2   : > { %p187_p1 = scmp.lt.s32.totalorder %s2531_s18, 6 }
   0x4   : > { %p188_p2 = pnand %p2127_p0, %p187_p1 }
   0x5   : > { %s217_s20 = smul.u32 (!%p188_p2), 7, %s2123_s19  ;;  %p2132_p4 = scmp.ne.s32.totalorder (!%p188_p2), %s2123_s19, 0 }
   0x6   : > { %191 = sbr.rel (%p188_p2) target bundleno = 1595 (0x63b), region = 36 }
   0x7   : > { %p218_p3 = scmp.lt.s32.totalorder (!%p188_p2), %s217_s20, 34 }
   0xb   : > { %s3061_s20 = smov (!%p218_p3, %s217_s20), 34  ;;  %234 = sbr.rel (%p2132_p4) target bundleno = 18 (0x12), region = 40 }
   0xc   : > { %s2384_s21 = sshll.u32 %s3061_s20, 4  ;;  %s2385_s22 = sshll.u32 %s3061_s20, 3 }
   0xd   : > { %s2574_s25 = scalar_lea.vmem %s3054_s0, %s2384_s21  ;;  %s2579_s28 = scalar_lea.vmem %s3058_s4, %s2385_s22 }
  0x10   : > { %v235_v0 = vld [vmem:[%s3057_s3] sm:$0xff]  ;;  %v236_v1 = vld [vmem:[%s3057_s3 + $0x8] sm:$0xff] }
  0x11   : > { %237 = vst [vmem:[#allocation2] sm:$0xff] %v235_v0  ;;  %238 = vst [vmem:[#allocation2 + $0x8] sm:$0xff] %v236_v1 }
  0x12 PF: > { %v2590_v2 = vld [vmem:[%s3055_s1 + $0x74] ss:$8 sps:$4 sm:$0xff]   ;;  %v2595_v3 = vld [vmem:[%s3055_s1 + $0x70] ss:$8 sps:$4 sm:$0xff]   ;;  %v2601_v4 = vld [vmem:[%s3055_s1 + $0x64] ss:$8 sps:$4 sm:$0xff]   ;;  %v482_v38 = vlaneseq }
  0x13   : > { %436 = vmatprep.subr.bf16.mxu0 %v2590_v2  ;;  %703 = vmatprep.subr.bf16.mxu1 %v2590_v2  ;;  %v2608_v5 = vld [vmem:[%s3055_s1 + $0x60] ss:$8 sps:$4 sm:$0xff]   ;;  %v2615_v6 = vld [vmem:[%s3055_s1 + $0x54] ss:$8 sps:$4 sm:$0xff]   ;;  %v2622_v7 = vld [vmem:[%s3055_s1 + $0x50] ss:$8 sps:$4 sm:$0xff]  }
  0x14   : > { %437 = vmatpush1.bf16.msra.mxu0 %v2595_v3  ;;  %704 = vmatpush1.bf16.msra.mxu1 %v2595_v3  ;;  %v2629_v8 = vld [vmem:[%s3055_s1 + $0x44] ss:$8 sps:$4 sm:$0xff]   ;;  %v2636_v9 = vld [vmem:[%s3055_s1 + $0x40] ss:$8 sps:$4 sm:$0xff]   ;;  %v2643_v10 = vld [vmem:[%s3055_s1 + $0x34] ss:$8 sps:$4 sm:$0xff]  }
  0x15   : > { %438 = vmatprep.subr.bf16.mxu0 %v2601_v4  ;;  %705 = vmatprep.subr.bf16.mxu1 %v2601_v4  ;;  %v2650_v11 = vld [vmem:[%s3055_s1 + $0x30] ss:$8 sps:$4 sm:$0xff]   ;;  %v2657_v12 = vld [vmem:[%s3055_s1 + $0x24] ss:$8 sps:$4 sm:$0xff]   ;;  %v2664_v13 = vld [vmem:[%s3055_s1 + $0x20] ss:$8 sps:$4 sm:$0xff]  }
  0x16   : > { %v2671_v14 = vld [vmem:[%s3055_s1 + $0x14] ss:$8 sps:$4 sm:$0xff]   ;;  %v2677_v15 = vld [vmem:[%s3055_s1 + $0x10] ss:$8 sps:$4 sm:$0xff]   ;;  %v2682_v17 = vld [vmem:[%s3055_s1 + $0x4] ss:$8 sps:$4 sm:$0xff]  }
  0x17   : > { %v2690_v19 = vld [vmem:[%s3055_s1] ss:$8 sps:$4 sm:$0xff]   ;;  %v2696_v20 = vld [vmem:[%s3055_s1 + $0xf4] ss:$8 sps:$4 sm:$0xff]   ;;  %v2705_v21 = vld [vmem:[%s3055_s1 + $0xf0] ss:$8 sps:$4 sm:$0xff]  }
  0x18   : > { %439 = vmatpush1.bf16.msra.mxu0 %v2608_v5  ;;  %706 = vmatpush1.bf16.msra.mxu1 %v2608_v5  ;;  %v241_v16 = vld [vmem:[#allocation2 + $0x8] sm:$0xff]  ;;  %v2727_v24 = vld [vmem:[%s3055_s1 + $0xd4] ss:$8 sps:$4 sm:$0xff]   ;;  %v2734_v25 = vld [vmem:[%s3055_s1 + $0xd0] ss:$8 sps:$4 sm:$0xff]   ;;  %v483_v39 = vshrl.u32 %v482_v38, 7 }
  0x19   : > { %440 = vmatprep.subr.bf16.mxu0 %v2615_v6  ;;  %707 = vmatprep.subr.bf16.mxu1 %v2615_v6  ;;  %v243_v18 = vpack.c.bf16 %v241_v16, %v241_v16  ;;  %v2710_v22 = vld [vmem:[%s3055_s1 + $0xe4] ss:$8 sps:$4 sm:$0xff]   ;;  %v2720_v23 = vld [vmem:[%s3055_s1 + $0xe0] ss:$8 sps:$4 sm:$0xff]   ;;  %v2755_v28 = vld [vmem:[%s3055_s1 + $0xb4] ss:$8 sps:$4 sm:$0xff]  }
  0x1a   : > { %v2741_v26 = vld [vmem:[%s3055_s1 + $0xc4] ss:$8 sps:$4 sm:$0xff]   ;;  %v2748_v27 = vld [vmem:[%s3055_s1 + $0xc0] ss:$8 sps:$4 sm:$0xff]   ;;  %v2762_v29 = vld [vmem:[%s3055_s1 + $0xb0] ss:$8 sps:$4 sm:$0xff]  }
  0x1b   : > { %468 = vmatprep.mubr.bf16.mxu0 %v243_v18  ;;  %v2769_v30 = vld [vmem:[%s3055_s1 + $0xa4] ss:$8 sps:$4 sm:$0xff]   ;;  %v2776_v31 = vld [vmem:[%s3055_s1 + $0xa0] ss:$8 sps:$4 sm:$0xff]   ;;  %v2783_v32 = vld [vmem:[%s3055_s1 + $0x94] ss:$8 sps:$4 sm:$0xff]  }
  0x1c   : > { %441 = vmatpush1.bf16.msra.mxu0 %v2622_v7  ;;  %708 = vmatpush1.bf16.msra.mxu1 %v2622_v7  ;;  %v2790_v33 = vld [vmem:[%s3055_s1 + $0x90] ss:$8 sps:$4 sm:$0xff]   ;;  %v2797_v34 = vld [vmem:[%s3055_s1 + $0x84] ss:$8 sps:$4 sm:$0xff]   ;;  %v2804_v35 = vld [vmem:[%s3055_s1 + $0x80] ss:$8 sps:$4 sm:$0xff]  }
  0x1d   : > { %442 = vmatprep.subr.bf16.mxu0 %v2629_v8  ;;  %709 = vmatprep.subr.bf16.mxu1 %v2629_v8  ;;  %v240_v36 = vld [vmem:[#allocation2] sm:$0xff]  ;;  %v484_v40 = vsub.s32 0, %v483_v39  ;;  %v488_v42 = vsub.s32 1, %v483_v39  ;;  %v478_v46 = vld [vmem:[%s2574_s25 + $0x8] sm:$0xff]  ;;  %v2198_v60 = vld [vmem:[%s2574_s25 + $0x10] sm:$0xff] }
  0x1e   : > { %v242_v37 = vpack.c.bf16 %v240_v36, %v240_v36  ;;  %v239_v41 = vld [vmem:[%s3056_s2] sm:$0x3]  ;;  %v2199_v62 = vld [vmem:[%s2574_s25 + $0x18] sm:$0xff] }
  0x1f   : > { %v477_v43 = vld [vmem:[%s2574_s25] sm:$0xff]  ;;  %v2849_v44 = vrot.slane %v239_v41, %v484_v40  ;;  %v2852_v48 = vrot.slane %v239_v41, %v488_v42  ;;  %v2270_v42 = vld [vmem:[%s2574_s25 + $0x30] sm:$0xff] }
  0x20   : > { %443 = vmatpush1.bf16.msra.mxu0 %v2636_v9  ;;  %710 = vmatpush1.bf16.msra.mxu1 %v2636_v9 }
  0x21   : > { %444 = vmatprep.subr.bf16.mxu0 %v2643_v10  ;;  %711 = vmatprep.subr.bf16.mxu1 %v2643_v10 }
  0x24   : > { %445 = vmatpush1.bf16.msra.mxu0 %v2650_v11  ;;  %712 = vmatpush1.bf16.msra.mxu1 %v2650_v11 }
  0x25   : > { %446 = vmatprep.subr.bf16.mxu0 %v2657_v12  ;;  %713 = vmatprep.subr.bf16.mxu1 %v2657_v12 }
  0x28   : > { %447 = vmatpush1.bf16.msra.mxu0 %v2664_v13  ;;  %714 = vmatpush1.bf16.msra.mxu1 %v2664_v13 }
  0x29   : > { %448 = vmatprep.subr.bf16.mxu0 %v2671_v14  ;;  %715 = vmatprep.subr.bf16.mxu1 %v2671_v14 }
  0x2c   : > { %449 = vmatpush1.bf16.msra.mxu0 %v2677_v15  ;;  %716 = vmatpush1.bf16.msra.mxu1 %v2677_v15 }
  0x2d   : > { %450 = vmatprep.subr.bf16.mxu0 %v2682_v17  ;;  %717 = vmatprep.subr.bf16.mxu1 %v2682_v17 }
  0x30   : > { %451 = vmatpush1.bf16.msra.mxu0 %v2690_v19  ;;  %718 = vmatpush1.bf16.msra.mxu1 %v2690_v19 }
  0x31   : > { %452 = vmatprep.subr.bf16.mxu0 %v2696_v20  ;;  %719 = vmatprep.subr.bf16.mxu1 %v2696_v20 }
  0x34   : > { %453 = vmatpush2.bf16.msra.mxu0 %v2705_v21  ;;  %720 = vmatpush2.bf16.msra.mxu1 %v2705_v21 }
  0x35   : > { %454 = vmatprep.subr.bf16.mxu0 %v2710_v22  ;;  %721 = vmatprep.subr.bf16.mxu1 %v2710_v22 }
  0x38   : > { %455 = vmatpush2.bf16.msra.mxu0 %v2720_v23  ;;  %722 = vmatpush2.bf16.msra.mxu1 %v2720_v23 }
  0x39   : > { %456 = vmatprep.subr.bf16.mxu0 %v2727_v24  ;;  %723 = vmatprep.subr.bf16.mxu1 %v2727_v24 }
  0x3c   : > { %457 = vmatpush2.bf16.msra.mxu0 %v2734_v25  ;;  %724 = vmatpush2.bf16.msra.mxu1 %v2734_v25 }
  0x3d   : > { %458 = vmatprep.subr.bf16.mxu0 %v2741_v26  ;;  %725 = vmatprep.subr.bf16.mxu1 %v2741_v26 }
  0x40   : > { %459 = vmatpush2.bf16.msra.mxu0 %v2748_v27  ;;  %726 = vmatpush2.bf16.msra.mxu1 %v2748_v27 }
  0x41   : > { %460 = vmatprep.subr.bf16.mxu0 %v2755_v28  ;;  %727 = vmatprep.subr.bf16.mxu1 %v2755_v28 }
  0x44   : > { %461 = vmatpush2.bf16.msra.mxu0 %v2762_v29  ;;  %728 = vmatpush2.bf16.msra.mxu1 %v2762_v29 }
  0x45   : > { %462 = vmatprep.subr.bf16.mxu0 %v2769_v30  ;;  %729 = vmatprep.subr.bf16.mxu1 %v2769_v30 }
  0x48   : > { %463 = vmatpush2.bf16.msra.mxu0 %v2776_v31  ;;  %730 = vmatpush2.bf16.msra.mxu1 %v2776_v31 }
  0x49   : > { %464 = vmatprep.subr.bf16.mxu0 %v2783_v32  ;;  %731 = vmatprep.subr.bf16.mxu1 %v2783_v32 }
  0x4c   : > { %465 = vmatpush2.bf16.msra.mxu0 %v2790_v33  ;;  %732 = vmatpush2.bf16.msra.mxu1 %v2790_v33 }
  0x4d   : > { %466 = vmatprep.subr.bf16.mxu0 %v2797_v34  ;;  %733 = vmatprep.subr.bf16.mxu1 %v2797_v34 }
  0x50   : > { %467 = vmatpush2.bf16.msra.mxu0 %v2804_v35  ;;  %734 = vmatpush2.bf16.msra.mxu1 %v2804_v35 }
  0x51   : > { %961 = vmatprep.subr.bf16.mxu0 %v2590_v2  ;;  %1219 = vmatprep.subr.bf16.mxu1 %v2590_v2 }
  0x53   : > { %469 = vmatmul.mubr.bf16.vlgmr.msra.gmra.mxu0 %v242_v37 }
  0x54   : > { %962 = vmatpush1.bf16.msra.mxu0 %v2595_v3 }
  0x55   : > { %963 = vmatprep.subr.bf16.mxu0 %v2601_v4 }
  0x58   : > { %964 = vmatpush1.bf16.msra.mxu0 %v2608_v5 }
  0x59   : > { %965 = vmatprep.subr.bf16.mxu0 %v2615_v6 }
  0x5c   : > { %966 = vmatpush1.bf16.msra.mxu0 %v2622_v7 }
  0x5d   : > { %967 = vmatprep.subr.bf16.mxu0 %v2629_v8 }
  0x60   : > { %968 = vmatpush1.bf16.msra.mxu0 %v2636_v9 }
  0x61   : > { %969 = vmatprep.subr.bf16.mxu0 %v2643_v10 }
  0x64   : > { %970 = vmatpush1.bf16.msra.mxu0 %v2650_v11 }
  0x65   : > { %971 = vmatprep.subr.bf16.mxu0 %v2657_v12 }
  0x68   : > { %972 = vmatpush1.bf16.msra.mxu0 %v2664_v13 }
  0x69   : > { %973 = vmatprep.subr.bf16.mxu0 %v2671_v14 }
  0x6c   : > { %974 = vmatpush1.bf16.msra.mxu0 %v2677_v15 }
  0x6d   : > { %975 = vmatprep.subr.bf16.mxu0 %v2682_v17 }
  0x70   : > { %976 = vmatpush1.bf16.msra.mxu0 %v2690_v19 }
  0x71   : > { %977 = vmatprep.subr.bf16.mxu0 %v2696_v20 }
  0x74   : > { %978 = vmatpush2.bf16.msra.mxu0 %v2705_v21 }
  0x75   : > { %979 = vmatprep.subr.bf16.mxu0 %v2710_v22 }
  0x78   : > { %980 = vmatpush2.bf16.msra.mxu0 %v2720_v23 }
  0x79   : > { %981 = vmatprep.subr.bf16.mxu0 %v2727_v24 }
  0x7c   : > { %982 = vmatpush2.bf16.msra.mxu0 %v2734_v25 }
  0x7d   : > { %983 = vmatprep.subr.bf16.mxu0 %v2741_v26 }
  0x80   : > { %984 = vmatpush2.bf16.msra.mxu0 %v2748_v27 }
  0x81   : > { %985 = vmatprep.subr.bf16.mxu0 %v2755_v28 }
  0x84   : > { %986 = vmatpush2.bf16.msra.mxu0 %v2762_v29 }
  0x85   : > { %987 = vmatprep.subr.bf16.mxu0 %v2769_v30 }
  0x88   : > { %988 = vmatpush2.bf16.msra.mxu0 %v2776_v31 }
  0x89   : > { %989 = vmatprep.subr.bf16.mxu0 %v2783_v32 }
  0x8c   : > { %990 = vmatpush2.bf16.msra.mxu0 %v2790_v33 }
  0x8d   : > { %991 = vmatprep.subr.bf16.mxu0 %v2797_v34 }
  0x90   : > { %992 = vmatpush2.bf16.msra.mxu0 %v2804_v35 }
  0x91   : > { %1477 = vmatprep.subr.bf16.mxu0 %v2590_v2 }
 0x113   : > { %v470_v45 = vpop.f32.mrf.mxu0 }
 0x114   : > { %v479_v47 = vadd.f32 %v477_v43, %v470_v45  ;;  %v2271_v45 = vld [vmem:[%s2574_s25 + $0x38] sm:$0xff] }
 0x115   : > { %v472_v49 = vpop.f32.mrf.mxu0 }
 0x116   : > { %v492_v50 = vadd.f32 %v2849_v44, %v479_v47  ;;  %v480_v51 = vadd.f32 %v478_v46, %v472_v49 }
 0x117   : > { %v474_v52 = vpop.f32.mrf.mxu0 }
 0x118   : > { %v493_v53 = vadd.f32 %v2852_v48, %v480_v51  ;;  %2497 = vtanh.f32 %v492_v50 }
 0x119   : > { %v475_v54 = vpop.f32.mrf.mxu0 }
 0x11a   : > { %2499 = vtanh.f32 %v493_v53 }
 0x125   : > { %v2498_v55 = vpop.eup %2497 }
 0x126   : > { %v509_v59 = vpack.c.bf16 %v2498_v55, %v2498_v55 }
 0x127   : > { %v2500_v56 = vpop.eup %2499 }
 0x128   : > { %v2386_v57 = vpack.c.bf16 %v2500_v56, %v2498_v55  ;;  %v510_v58 = vpack.c.bf16 %v2500_v56, %v2500_v56 }
 0x12a   : > { %506 = vst [vmem:[%s2579_s28] sm:$0xff] %v2386_v57  ;;  %735 = vmatprep.mubr.bf16.mxu1 %v510_v58 }
 0x12b   : > { %736 = vmatmul.mubr.bf16.vlgmr.msra.gmra.mxu1 %v509_v59  ;;  %v2475_v59 = vld [vmem:[%s3055_s1 + $0xf4] ss:$8 sps:$4 sm:$0xff]  }
 0x12c   : > { %1220 = vmatpush1.bf16.msra.mxu1 %v2595_v3 }
 0x12d   : > { %1221 = vmatprep.subr.bf16.mxu1 %v2601_v4 }
 0x130   : > { %1222 = vmatpush1.bf16.msra.mxu1 %v2608_v5 }
 0x131   : > { %1223 = vmatprep.subr.bf16.mxu1 %v2615_v6 }
 0x134   : > { %1224 = vmatpush1.bf16.msra.mxu1 %v2622_v7 }
 0x135   : > { %1225 = vmatprep.subr.bf16.mxu1 %v2629_v8 }
 0x138   : > { %1226 = vmatpush1.bf16.msra.mxu1 %v2636_v9 }
 0x139   : > { %1227 = vmatprep.subr.bf16.mxu1 %v2643_v10 }
 0x13c   : > { %1228 = vmatpush1.bf16.msra.mxu1 %v2650_v11 }
 0x13d   : > { %1229 = vmatprep.subr.bf16.mxu1 %v2657_v12 }
 0x140   : > { %1230 = vmatpush1.bf16.msra.mxu1 %v2664_v13 }
 0x141   : > { %1231 = vmatprep.subr.bf16.mxu1 %v2671_v14 }
 0x144   : > { %1232 = vmatpush1.bf16.msra.mxu1 %v2677_v15 }
 0x145   : > { %1233 = vmatprep.subr.bf16.mxu1 %v2682_v17 }
 0x148   : > { %1234 = vmatpush1.bf16.msra.mxu1 %v2690_v19 }
 0x149   : > { %1235 = vmatprep.subr.bf16.mxu1 %v2696_v20 }
 0x14c   : > { %1236 = vmatpush2.bf16.msra.mxu1 %v2705_v21 }
 0x14d   : > { %1237 = vmatprep.subr.bf16.mxu1 %v2710_v22 }
 0x150   : > { %1238 = vmatpush2.bf16.msra.mxu1 %v2720_v23 }
 0x151   : > { %1239 = vmatprep.subr.bf16.mxu1 %v2727_v24 }
 0x154   : > { %1240 = vmatpush2.bf16.msra.mxu1 %v2734_v25 }
 0x155   : > { %1241 = vmatprep.subr.bf16.mxu1 %v2741_v26 }
 0x158   : > { %1242 = vmatpush2.bf16.msra.mxu1 %v2748_v27 }
 0x159   : > { %1243 = vmatprep.subr.bf16.mxu1 %v2755_v28 }
 0x15c   : > { %1244 = vmatpush2.bf16.msra.mxu1 %v2762_v29 }
 0x15d   : > { %1245 = vmatprep.subr.bf16.mxu1 %v2769_v30 }
 0x160   : > { %1246 = vmatpush2.bf16.msra.mxu1 %v2776_v31 }
 0x161   : > { %1247 = vmatprep.subr.bf16.mxu1 %v2783_v32 }
 0x164   : > { %1248 = vmatpush2.bf16.msra.mxu1 %v2790_v33 }
 0x165   : > { %1249 = vmatprep.subr.bf16.mxu1 %v2797_v34 }
 0x168   : > { %1250 = vmatpush2.bf16.msra.mxu1 %v2804_v35 }
 0x1eb   : > { %v737_v61 = vpop.f32.mrf.mxu1 }
 0x1ec   : > { %v747_v63 = vadd.f32 %v2198_v60, %v737_v61  ;;  %v2473_v60 = vld [vmem:[%s3055_s1 + $0xf0] ss:$8 sps:$4 sm:$0xff]   ;;  %v2478_v61 = vld [vmem:[%s3055_s1 + $0xe4] ss:$8 sps:$4 sm:$0xff]  }
 0x1ed   : > { %v739_v0 = vpop.f32.mrf.mxu1 }
 0x1ee   : > { %v749_v1 = vadd.f32 %v747_v63, %v2849_v44  ;;  %v748_v2 = vadd.f32 %v2199_v62, %v739_v0  ;;  %v2476_v62 = vld [vmem:[%s3055_s1 + $0xe0] ss:$8 sps:$4 sm:$0xff]   ;;  %v2481_v63 = vld [vmem:[%s3055_s1 + $0xd4] ss:$8 sps:$4 sm:$0xff]   ;;  %v2479_v0 = vld [vmem:[%s3055_s1 + $0xd0] ss:$8 sps:$4 sm:$0xff]  }
 0x1ef   : > { %v741_v16 = vpop.f32.mrf.mxu1 }
 0x1f0   : > { %v750_v18 = vadd.f32 %v748_v2, %v2852_v48  ;;  %2501 = vtanh.f32 %v749_v1  ;;  %v2484_v1 = vld [vmem:[%s3055_s1 + $0xc4] ss:$8 sps:$4 sm:$0xff]   ;;  %v2482_v2 = vld [vmem:[%s3055_s1 + $0xc0] ss:$8 sps:$4 sm:$0xff]   ;;  %v2487_v16 = vld [vmem:[%s3055_s1 + $0xb4] ss:$8 sps:$4 sm:$0xff]  }
 0x1f1   : > { %v742_v36 = vpop.f32.mrf.mxu1 }
 0x1f2   : > { %2503 = vtanh.f32 %v750_v18  ;;  %v2485_v18 = vld [vmem:[%s3055_s1 + $0xb0] ss:$8 sps:$4 sm:$0xff]   ;;  %v2490_v36 = vld [vmem:[%s3055_s1 + $0xa4] ss:$8 sps:$4 sm:$0xff]  }
 0x1fd   : > { %v2502_v37 = vpop.eup %2501 }
 0x1fe   : > { %v767_v41 = vpack.c.bf16 %v2502_v37, %v2502_v37 }
 0x1ff   : > { %v2504_v38 = vpop.eup %2503 }
 0x200   : > { %v2387_v39 = vpack.c.bf16 %v2504_v38, %v2502_v37  ;;  %v768_v40 = vpack.c.bf16 %v2504_v38, %v2504_v38  ;;  %v2488_v37 = vld [vmem:[%s3055_s1 + $0xa0] ss:$8 sps:$4 sm:$0xff]   ;;  %v2493_v38 = vld [vmem:[%s3055_s1 + $0x94] ss:$8 sps:$4 sm:$0xff]  }
 0x202   : > { %2201 = vst [vmem:[%s2579_s28 + $0x8] sm:$0xff] %v2387_v39  ;;  %993 = vmatprep.mubr.bf16.mxu0 %v768_v40  ;;  %v2491_v39 = vld [vmem:[%s3055_s1 + $0x90] ss:$8 sps:$4 sm:$0xff]   ;;  %v2496_v40 = vld [vmem:[%s3055_s1 + $0x84] ss:$8 sps:$4 sm:$0xff]  }
 0x203   : > { %994 = vmatmul.mubr.bf16.vlgmr.msra.gmra.mxu0 %v767_v41  ;;  %v2494_v41 = vld [vmem:[%s3055_s1 + $0x80] ss:$8 sps:$4 sm:$0xff]  }
 0x204   : > { %1478 = vmatpush1.bf16.msra.mxu0 %v2595_v3  ;;  %v2234_v3 = vld [vmem:[%s2574_s25 + $0x20] sm:$0xff] }
 0x205   : > { %1479 = vmatprep.subr.bf16.mxu0 %v2601_v4 }
 0x208   : > { %1480 = vmatpush1.bf16.msra.mxu0 %v2608_v5  ;;  %v2235_v5 = vld [vmem:[%s2574_s25 + $0x28] sm:$0xff] }
 0x209   : > { %1481 = vmatprep.subr.bf16.mxu0 %v2615_v6 }
 0x20c   : > { %1482 = vmatpush1.bf16.msra.mxu0 %v2622_v7 }
 0x20d   : > { %1483 = vmatprep.subr.bf16.mxu0 %v2629_v8 }
 0x210   : > { %1484 = vmatpush1.bf16.msra.mxu0 %v2636_v9 }
 0x211   : > { %1485 = vmatprep.subr.bf16.mxu0 %v2643_v10 }
 0x214   : > { %1486 = vmatpush1.bf16.msra.mxu0 %v2650_v11 }
 0x215   : > { %1487 = vmatprep.subr.bf16.mxu0 %v2657_v12 }
 0x218   : > { %1488 = vmatpush1.bf16.msra.mxu0 %v2664_v13 }
 0x219   : > { %1489 = vmatprep.subr.bf16.mxu0 %v2671_v14 }
 0x21c   : > { %1490 = vmatpush1.bf16.msra.mxu0 %v2677_v15 }
 0x21d   : > { %1491 = vmatprep.subr.bf16.mxu0 %v2682_v17 }
 0x220   : > { %1492 = vmatpush1.bf16.msra.mxu0 %v2690_v19 }
 0x221   : > { %1493 = vmatprep.subr.bf16.mxu0 %v2696_v20  ;;  %v2449_v20 = vld [vmem:[%s3055_s1 + $0x70] ss:$8 sps:$4 sm:$0xff]  }
 0x224   : > { %1494 = vmatpush2.bf16.msra.mxu0 %v2705_v21  ;;  %v2451_v21 = vld [vmem:[%s3055_s1 + $0x74] ss:$8 sps:$4 sm:$0xff]  }
 0x225   : > { %1495 = vmatprep.subr.bf16.mxu0 %v2710_v22  ;;  %v2454_v22 = vld [vmem:[%s3055_s1 + $0x64] ss:$8 sps:$4 sm:$0xff]   ;;  %1735 = vmatprep.subr.bf16.mxu1 %v2451_v21 }
 0x228   : > { %1496 = vmatpush2.bf16.msra.mxu0 %v2720_v23  ;;  %v2452_v23 = vld [vmem:[%s3055_s1 + $0x60] ss:$8 sps:$4 sm:$0xff]  }
 0x229   : > { %1497 = vmatprep.subr.bf16.mxu0 %v2727_v24  ;;  %v2457_v24 = vld [vmem:[%s3055_s1 + $0x54] ss:$8 sps:$4 sm:$0xff]  }
 0x22c   : > { %1498 = vmatpush2.bf16.msra.mxu0 %v2734_v25  ;;  %v2455_v25 = vld [vmem:[%s3055_s1 + $0x50] ss:$8 sps:$4 sm:$0xff]  }
 0x22d   : > { %1499 = vmatprep.subr.bf16.mxu0 %v2741_v26  ;;  %v2460_v26 = vld [vmem:[%s3055_s1 + $0x44] ss:$8 sps:$4 sm:$0xff]  }
 0x230   : > { %1500 = vmatpush2.bf16.msra.mxu0 %v2748_v27  ;;  %v2458_v27 = vld [vmem:[%s3055_s1 + $0x40] ss:$8 sps:$4 sm:$0xff]  }
 0x231   : > { %1501 = vmatprep.subr.bf16.mxu0 %v2755_v28  ;;  %v2463_v28 = vld [vmem:[%s3055_s1 + $0x34] ss:$8 sps:$4 sm:$0xff]  }
 0x234   : > { %1502 = vmatpush2.bf16.msra.mxu0 %v2762_v29  ;;  %v2461_v29 = vld [vmem:[%s3055_s1 + $0x30] ss:$8 sps:$4 sm:$0xff]  }
 0x235   : > { %1503 = vmatprep.subr.bf16.mxu0 %v2769_v30  ;;  %v2466_v30 = vld [vmem:[%s3055_s1 + $0x24] ss:$8 sps:$4 sm:$0xff]  }
 0x238   : > { %1504 = vmatpush2.bf16.msra.mxu0 %v2776_v31  ;;  %v2464_v31 = vld [vmem:[%s3055_s1 + $0x20] ss:$8 sps:$4 sm:$0xff]  }
 0x239   : > { %1505 = vmatprep.subr.bf16.mxu0 %v2783_v32  ;;  %v2469_v32 = vld [vmem:[%s3055_s1 + $0x14] ss:$8 sps:$4 sm:$0xff]  }
 0x23c   : > { %1506 = vmatpush2.bf16.msra.mxu0 %v2790_v33  ;;  %v2467_v33 = vld [vmem:[%s3055_s1 + $0x10] ss:$8 sps:$4 sm:$0xff]  }
 0x23d   : > { %1507 = vmatprep.subr.bf16.mxu0 %v2797_v34  ;;  %v2472_v34 = vld [vmem:[%s3055_s1 + $0x4] ss:$8 sps:$4 sm:$0xff]  }
 0x240   : > { %1508 = vmatpush2.bf16.msra.mxu0 %v2804_v35  ;;  %v2470_v35 = vld [vmem:[%s3055_s1] ss:$8 sps:$4 sm:$0xff]  }
 0x241   : > { %1993 = vmatprep.subr.bf16.mxu0 %v2451_v21 }
 0x2c3   : > { %v995_v4 = vpop.f32.mrf.mxu0 }
 0x2c4   : > { %v1005_v6 = vadd.f32 %v2234_v3, %v995_v4  ;;  %v2306_v3 = vld [vmem:[%s2574_s25 + $0x40] sm:$0xff] }
 0x2c5   : > { %v997_v7 = vpop.f32.mrf.mxu0 }
 0x2c6   : > { %v1007_v8 = vadd.f32 %v1005_v6, %v2849_v44  ;;  %v1006_v9 = vadd.f32 %v2235_v5, %v997_v7  ;;  %v2307_v5 = vld [vmem:[%s2574_s25 + $0x48] sm:$0xff] }
 0x2c7   : > { %v999_v10 = vpop.f32.mrf.mxu0 }
 0x2c8   : > { %v1008_v11 = vadd.f32 %v1006_v9, %v2852_v48  ;;  %2505 = vtanh.f32 %v1007_v8 }
 0x2c9   : > { %v1000_v12 = vpop.f32.mrf.mxu0 }
 0x2ca   : > { %2507 = vtanh.f32 %v1008_v11 }
 0x2d5   : > { %v2506_v13 = vpop.eup %2505 }
 0x2d6   : > { %v1025_v19 = vpack.c.bf16 %v2506_v13, %v2506_v13 }
 0x2d7   : > { %v2508_v14 = vpop.eup %2507 }
 0x2d8   : > { %v2388_v15 = vpack.c.bf16 %v2508_v14, %v2506_v13  ;;  %v1026_v17 = vpack.c.bf16 %v2508_v14, %v2508_v14 }
 0x2da   : > { %2237 = vst [vmem:[%s2579_s28 + $0x10] sm:$0xff] %v2388_v15  ;;  %1251 = vmatprep.mubr.bf16.mxu1 %v1026_v17 }
 0x2db   : > { %1252 = vmatmul.mubr.bf16.vlgmr.msra.gmra.mxu1 %v1025_v19 }
 0x2dc   : > { %1736 = vmatpush1.bf16.msra.mxu1 %v2449_v20 }
 0x2dd   : > { %1737 = vmatprep.subr.bf16.mxu1 %v2454_v22 }
 0x2e0   : > { %1738 = vmatpush1.bf16.msra.mxu1 %v2452_v23 }
 0x2e1   : > { %1739 = vmatprep.subr.bf16.mxu1 %v2457_v24 }
 0x2e4   : > { %1740 = vmatpush1.bf16.msra.mxu1 %v2455_v25 }
 0x2e5   : > { %1741 = vmatprep.subr.bf16.mxu1 %v2460_v26 }
 0x2e8   : > { %1742 = vmatpush1.bf16.msra.mxu1 %v2458_v27 }
 0x2e9   : > { %1743 = vmatprep.subr.bf16.mxu1 %v2463_v28 }
 0x2ec   : > { %1744 = vmatpush1.bf16.msra.mxu1 %v2461_v29 }
 0x2ed   : > { %1745 = vmatprep.subr.bf16.mxu1 %v2466_v30 }
 0x2f0   : > { %1746 = vmatpush1.bf16.msra.mxu1 %v2464_v31 }
 0x2f1   : > { %1747 = vmatprep.subr.bf16.mxu1 %v2469_v32 }
 0x2f4   : > { %1748 = vmatpush1.bf16.msra.mxu1 %v2467_v33 }
 0x2f5   : > { %1749 = vmatprep.subr.bf16.mxu1 %v2472_v34 }
 0x2f8   : > { %1750 = vmatpush1.bf16.msra.mxu1 %v2470_v35 }
 0x2f9   : > { %1751 = vmatprep.subr.bf16.mxu1 %v2475_v59 }
 0x2fc   : > { %1752 = vmatpush2.bf16.msra.mxu1 %v2473_v60 }
 0x2fd   : > { %1753 = vmatprep.subr.bf16.mxu1 %v2478_v61 }
 0x300   : > { %1754 = vmatpush2.bf16.msra.mxu1 %v2476_v62 }
 0x301   : > { %1755 = vmatprep.subr.bf16.mxu1 %v2481_v63 }
 0x304   : > { %1756 = vmatpush2.bf16.msra.mxu1 %v2479_v0 }
 0x305   : > { %1757 = vmatprep.subr.bf16.mxu1 %v2484_v1 }
 0x308   : > { %1758 = vmatpush2.bf16.msra.mxu1 %v2482_v2 }
 0x309   : > { %1759 = vmatprep.subr.bf16.mxu1 %v2487_v16 }
 0x30c   : > { %1760 = vmatpush2.bf16.msra.mxu1 %v2485_v18 }
 0x30d   : > { %1761 = vmatprep.subr.bf16.mxu1 %v2490_v36 }
 0x310   : > { %1762 = vmatpush2.bf16.msra.mxu1 %v2488_v37 }
 0x311   : > { %1763 = vmatprep.subr.bf16.mxu1 %v2493_v38 }
 0x314   : > { %1764 = vmatpush2.bf16.msra.mxu1 %v2491_v39 }
 0x315   : > { %1765 = vmatprep.subr.bf16.mxu1 %v2496_v40 }
 0x318   : > { %1766 = vmatpush2.bf16.msra.mxu1 %v2494_v41 }
 0x39b   : > { %v1253_v43 = vpop.f32.mrf.mxu1 }
 0x39c   : > { %v1263_v46 = vadd.f32 %v2270_v42, %v1253_v43  ;;  %v2379_v43 = vld [vmem:[%s2574_s25 + $0x68] sm:$0xff] }
 0x39d   : > { %v1255_v47 = vpop.f32.mrf.mxu1 }
 0x39e   : > { %v1265_v49 = vadd.f32 %v1263_v46, %v2849_v44  ;;  %v1264_v50 = vadd.f32 %v2271_v45, %v1255_v47 }
 0x39f   : > { %v1257_v51 = vpop.f32.mrf.mxu1 }
 0x3a0   : > { %v1266_v52 = vadd.f32 %v1264_v50, %v2852_v48  ;;  %2509 = vtanh.f32 %v1265_v49 }
 0x3a1   : > { %v1258_v53 = vpop.f32.mrf.mxu1 }
 0x3a2   : > { %2511 = vtanh.f32 %v1266_v52 }
 0x3ad   : > { %v2510_v54 = vpop.eup %2509 }
 0x3ae   : > { %v1283_v58 = vpack.c.bf16 %v2510_v54, %v2510_v54 }
 0x3af   : > { %v2512_v55 = vpop.eup %2511 }
 0x3b0   : > { %v2389_v56 = vpack.c.bf16 %v2512_v55, %v2510_v54  ;;  %v1284_v57 = vpack.c.bf16 %v2512_v55, %v2512_v55 }
 0x3b2   : > { %2273 = vst [vmem:[%s2579_s28 + $0x18] sm:$0xff] %v2389_v56  ;;  %1509 = vmatprep.mubr.bf16.mxu0 %v1284_v57 }
 0x3b3   : > { %1510 = vmatmul.mubr.bf16.vlgmr.msra.gmra.mxu0 %v1283_v58 }
 0x3b4   : > { %1994 = vmatpush1.bf16.msra.mxu0 %v2449_v20  ;;  %v2342_v20 = vld [vmem:[%s2574_s25 + $0x50] sm:$0xff] }
 0x3b5   : > { %1995 = vmatprep.subr.bf16.mxu0 %v2454_v22  ;;  %v2343_v22 = vld [vmem:[%s2574_s25 + $0x58] sm:$0xff] }
 0x3b8   : > { %1996 = vmatpush1.bf16.msra.mxu0 %v2452_v23 }
 0x3b9   : > { %1997 = vmatprep.subr.bf16.mxu0 %v2457_v24 }
 0x3bc   : > { %1998 = vmatpush1.bf16.msra.mxu0 %v2455_v25 }
 0x3bd   : > { %1999 = vmatprep.subr.bf16.mxu0 %v2460_v26 }
 0x3c0   : > { %2000 = vmatpush1.bf16.msra.mxu0 %v2458_v27 }
 0x3c1   : > { %2001 = vmatprep.subr.bf16.mxu0 %v2463_v28 }
 0x3c4   : > { %2002 = vmatpush1.bf16.msra.mxu0 %v2461_v29 }
 0x3c5   : > { %2003 = vmatprep.subr.bf16.mxu0 %v2466_v30 }
 0x3c8   : > { %2004 = vmatpush1.bf16.msra.mxu0 %v2464_v31 }
 0x3c9   : > { %2005 = vmatprep.subr.bf16.mxu0 %v2469_v32 }
 0x3cc   : > { %2006 = vmatpush1.bf16.msra.mxu0 %v2467_v33 }
 0x3cd   : > { %2007 = vmatprep.subr.bf16.mxu0 %v2472_v34 }
 0x3d0   : > { %2008 = vmatpush1.bf16.msra.mxu0 %v2470_v35  ;;  %v2378_v35 = vld [vmem:[%s2574_s25 + $0x60] sm:$0xff] }
 0x3d1   : > { %2009 = vmatprep.subr.bf16.mxu0 %v2475_v59 }
 0x3d4   : > { %2010 = vmatpush2.bf16.msra.mxu0 %v2473_v60 }
 0x3d5   : > { %2011 = vmatprep.subr.bf16.mxu0 %v2478_v61 }
 0x3d8   : > { %2012 = vmatpush2.bf16.msra.mxu0 %v2476_v62 }
 0x3d9   : > { %2013 = vmatprep.subr.bf16.mxu0 %v2481_v63 }
 0x3dc   : > { %2014 = vmatpush2.bf16.msra.mxu0 %v2479_v0 }
 0x3dd   : > { %2015 = vmatprep.subr.bf16.mxu0 %v2484_v1 }
 0x3e0   : > { %2016 = vmatpush2.bf16.msra.mxu0 %v2482_v2 }
 0x3e1   : > { %2017 = vmatprep.subr.bf16.mxu0 %v2487_v16 }
 0x3e4   : > { %2018 = vmatpush2.bf16.msra.mxu0 %v2485_v18 }
 0x3e5   : > { %2019 = vmatprep.subr.bf16.mxu0 %v2490_v36 }
 0x3e8   : > { %2020 = vmatpush2.bf16.msra.mxu0 %v2488_v37 }
 0x3e9   : > { %2021 = vmatprep.subr.bf16.mxu0 %v2493_v38 }
 0x3ec   : > { %2022 = vmatpush2.bf16.msra.mxu0 %v2491_v39 }
 0x3ed   : > { %2023 = vmatprep.subr.bf16.mxu0 %v2496_v40 }
 0x3f0   : > { %2024 = vmatpush2.bf16.msra.mxu0 %v2494_v41 }
 0x473   : > { %v1511_v4 = vpop.f32.mrf.mxu0 }
 0x474   : > { %v1521_v6 = vadd.f32 %v2306_v3, %v1511_v4 }
 0x475   : > { %v1513_v7 = vpop.f32.mrf.mxu0 }
 0x476   : > { %v1523_v8 = vadd.f32 %v1521_v6, %v2849_v44  ;;  %v1522_v9 = vadd.f32 %v2307_v5, %v1513_v7 }
 0x477   : > { %v1515_v10 = vpop.f32.mrf.mxu0 }
 0x478   : > { %v1524_v11 = vadd.f32 %v1522_v9, %v2852_v48  ;;  %2513 = vtanh.f32 %v1523_v8 }
 0x479   : > { %v1516_v12 = vpop.f32.mrf.mxu0 }
 0x47a   : > { %2515 = vtanh.f32 %v1524_v11 }
 0x485   : > { %v2514_v13 = vpop.eup %2513 }
 0x486   : > { %v1541_v19 = vpack.c.bf16 %v2514_v13, %v2514_v13 }
 0x487   : > { %v2516_v14 = vpop.eup %2515 }
 0x488   : > { %v2390_v15 = vpack.c.bf16 %v2516_v14, %v2514_v13  ;;  %v1542_v17 = vpack.c.bf16 %v2516_v14, %v2516_v14 }
 0x48a   : > { %2309 = vst [vmem:[%s2579_s28 + $0x20] sm:$0xff] %v2390_v15  ;;  %1767 = vmatprep.mubr.bf16.mxu1 %v1542_v17 }
 0x48b   : > { %1768 = vmatmul.mubr.bf16.vlgmr.msra.gmra.mxu1 %v1541_v19 }
 0x54b   : > { %v1769_v21 = vpop.f32.mrf.mxu1 }
 0x54c   : > { %v1779_v23 = vadd.f32 %v2342_v20, %v1769_v21 }
 0x54d   : > { %v1771_v24 = vpop.f32.mrf.mxu1 }
 0x54e   : > { %v1781_v25 = vadd.f32 %v1779_v23, %v2849_v44  ;;  %v1780_v26 = vadd.f32 %v2343_v22, %v1771_v24 }
 0x54f   : > { %v1773_v27 = vpop.f32.mrf.mxu1 }
 0x550   : > { %v1782_v28 = vadd.f32 %v1780_v26, %v2852_v48  ;;  %2517 = vtanh.f32 %v1781_v25 }
 0x551   : > { %v1774_v29 = vpop.f32.mrf.mxu1 }
 0x552   : > { %2519 = vtanh.f32 %v1782_v28 }
 0x55d   : > { %v2518_v30 = vpop.eup %2517 }
 0x55e   : > { %v1799_v34 = vpack.c.bf16 %v2518_v30, %v2518_v30 }
 0x55f   : > { %v2520_v31 = vpop.eup %2519 }
 0x560   : > { %v2391_v32 = vpack.c.bf16 %v2520_v31, %v2518_v30  ;;  %v1800_v33 = vpack.c.bf16 %v2520_v31, %v2520_v31 }
 0x562   : > { %2345 = vst [vmem:[%s2579_s28 + $0x28] sm:$0xff] %v2391_v32  ;;  %2025 = vmatprep.mubr.bf16.mxu0 %v1800_v33 }
 0x563   : > { %2026 = vmatmul.mubr.bf16.vlgmr.msra.gmra.mxu0 %v1799_v34 }
 0x623   : > { %v2027_v42 = vpop.f32.mrf.mxu0 }
 0x624   : > { %v2037_v45 = vadd.f32 %v2378_v35, %v2027_v42 }
 0x625   : > { %v2029_v46 = vpop.f32.mrf.mxu0 }
 0x626   : > { %v2039_v47 = vadd.f32 %v2037_v45, %v2849_v44  ;;  %v2038_v49 = vadd.f32 %v2379_v43, %v2029_v46 }
 0x627   : > { %v2031_v50 = vpop.f32.mrf.mxu0 }
 0x628   : > { %2521 = vtanh.f32 %v2039_v47  ;;  %v2040_v51 = vadd.f32 %v2038_v49, %v2852_v48 }
 0x629   : > { %v2032_v52 = vpop.f32.mrf.mxu0 }
 0x62a   : > { %2523 = vtanh.f32 %v2040_v51 }
 0x635   : > { %v2522_v53 = vpop.eup %2521 }
 0x636   : > { %2043 = vst [vmem:[#allocation2] sm:$0xff] %v2522_v53  ;;  %2057 = vst [vmem:[%s3059_s5] sm:$0xff] %v2522_v53 }
 0x637   : > { %v2524_v54 = vpop.eup %2523 }
 0x638   : > { %2044 = vst [vmem:[#allocation2 + $0x8] sm:$0xff] %v2524_v54  ;;  %v2392_v55 = vpack.c.bf16 %v2524_v54, %v2522_v53  ;;  %2058 = vst [vmem:[%s3059_s5 + $0x8] sm:$0xff] %v2524_v54 }
 0x63a   : > { %2381 = vst [vmem:[%s2579_s28 + $0x30] sm:$0xff] %v2392_v55 }
 0x63b PF: > { %s16_s18 = sadd.s32 1, %s2531_s18  }
 0x63c   : > { %p13_p5 = scmp.ge.s32.totalorder %s16_s18, 7  }
 0x63e   :  { %15 = sbr.rel (!%p13_p5) target bundleno = 1 (0x1), region = 90 }

// kernel: rnn_model_forward.3
= control target key start
LH: loop header
LB: loop body
LE: loop exit
PB: predicated region body
PF: predicated region fallthrough
CT: control target
= control target key end

     0   :  { %s2582_s12 = smov 0   ;;  %s3553_s0 = inlined_call_operand.vmem [shape: bf16[288,256], index: 0, kind: input, shape index: {}]   ;;  %s3554_s1 = inlined_call_operand.vmem [shape: bf16[256,1152], index: 1, kind: input, shape index: {}]   ;;  %s3555_s2 = inlined_call_operand.vmem [shape: f32[1,1152], index: 2, kind: input, shape index: {}]   ;;  %s3556_s3 = inlined_call_operand.vmem [shape: f32[288,1152], index: 3, kind: output, shape index: {}]  }
   0x1 LB: > { %s2050_s13 = sadd.s32 4294967295, %s2560_s12   ;;  %p2054_p0 = scmp.ge.s32.totalorder %s2560_s12, 1  ;;  %s2560_s12 = sphi %s2582_s12, %s13_s12  }
   0x2   : > { %p139_p1 = scmp.lt.s32.totalorder %s2560_s12, 3 }
   0x4   : > { %p140_p2 = pnand %p2054_p0, %p139_p1 }
   0x5   : > { %s165_s20 = smul.u32 (!%p140_p2), 18, %s2050_s13 }
   0x6   : > { %143 = sbr.rel (%p140_p2) target bundleno = 456 (0x1c8), region = 32 }
   0x7   : > { %p166_p3 = scmp.lt.s32.totalorder (!%p140_p2), %s165_s20, 35 }
   0xb   : > { %v2319_v0 = vld [vmem:[%s3554_s1 + $0x1fc] ss:$36 sps:$4 sm:$0xff]   ;;  %v2322_v2 = vld [vmem:[%s3554_s1 + $0x204] ss:$36 sps:$4 sm:$0xff]   ;;  %v2324_v3 = vld [vmem:[%s3554_s1 + $0x1b4] ss:$36 sps:$4 sm:$0xff]  }
   0xc   : > { %v2321_v1 = vld [vmem:[%s3554_s1 + $0x1f8] ss:$36 sps:$4 sm:$0xff]   ;;  %1233 = vmatprep.subr.bf16.mxu0 %v2319_v0  ;;  %v2326_v4 = vld [vmem:[%s3554_s1 + $0x200] ss:$36 sps:$4 sm:$0xff]   ;;  %v2327_v5 = vld [vmem:[%s3554_s1 + $0x1b0] ss:$36 sps:$4 sm:$0xff]   ;;  %1356 = vmatprep.subr.bf16.mxu1 %v2322_v2 }
   0xd   : > { %1234 = vmatpush1.bf16.msra.mxu0 %v2321_v1  ;;  %v2328_v6 = vld [vmem:[%s3554_s1 + $0x1bc] ss:$36 sps:$4 sm:$0xff]   ;;  %1357 = vmatpush1.bf16.msra.mxu1 %v2326_v4  ;;  %v2330_v7 = vld [vmem:[%s3554_s1 + $0x16c] ss:$36 sps:$4 sm:$0xff]   ;;  %v2334_v10 = vld [vmem:[%s3554_s1 + $0x174] ss:$36 sps:$4 sm:$0xff]  }
   0xe   : > { %1235 = vmatprep.subr.bf16.mxu0 %v2324_v3  ;;  %1358 = vmatprep.subr.bf16.mxu1 %v2328_v6  ;;  %v2332_v8 = vld [vmem:[%s3554_s1 + $0x1b8] ss:$36 sps:$4 sm:$0xff]   ;;  %v2333_v9 = vld [vmem:[%s3554_s1 + $0x168] ss:$36 sps:$4 sm:$0xff]   ;;  %v2338_v12 = vld [vmem:[%s3554_s1 + $0x170] ss:$36 sps:$4 sm:$0xff]  }
   0xf   : > { %v2336_v11 = vld [vmem:[%s3554_s1 + $0x124] ss:$36 sps:$4 sm:$0xff]   ;;  %v2340_v13 = vld [vmem:[%s3554_s1 + $0x12c] ss:$36 sps:$4 sm:$0xff]   ;;  %v2342_v15 = vld [vmem:[%s3554_s1 + $0xdc] ss:$36 sps:$4 sm:$0xff]  }
  0x10   : > { %v2339_v14 = vld [vmem:[%s3554_s1 + $0x120] ss:$36 sps:$4 sm:$0xff]   ;;  %v2344_v16 = vld [vmem:[%s3554_s1 + $0x128] ss:$36 sps:$4 sm:$0xff]   ;;  %v2345_v18 = vld [vmem:[%s3554_s1 + $0xd8] ss:$36 sps:$4 sm:$0xff]  }
  0x11   : > { %1236 = vmatpush1.bf16.msra.mxu0 %v2327_v5  ;;  %1359 = vmatpush1.bf16.msra.mxu1 %v2332_v8  ;;  %v2346_v17 = vld [vmem:[%s3554_s1 + $0xe4] ss:$36 sps:$4 sm:$0xff]   ;;  %v2348_v19 = vld [vmem:[%s3554_s1 + $0x94] ss:$36 sps:$4 sm:$0xff]   ;;  %v2352_v21 = vld [vmem:[%s3554_s1 + $0x9c] ss:$36 sps:$4 sm:$0xff]  }
  0x12   : > { %1237 = vmatprep.subr.bf16.mxu0 %v2330_v7  ;;  %1360 = vmatprep.subr.bf16.mxu1 %v2334_v10  ;;  %v2350_v20 = vld [vmem:[%s3554_s1 + $0xe0] ss:$36 sps:$4 sm:$0xff]   ;;  %v2351_v22 = vld [vmem:[%s3554_s1 + $0x90] ss:$36 sps:$4 sm:$0xff]   ;;  %v2356_v24 = vld [vmem:[%s3554_s1 + $0x98] ss:$36 sps:$4 sm:$0xff]  }
  0x13   : > { %v2354_v23 = vld [vmem:[%s3554_s1 + $0x4c] ss:$36 sps:$4 sm:$0xff]   ;;  %v2358_v25 = vld [vmem:[%s3554_s1 + $0x54] ss:$36 sps:$4 sm:$0xff]   ;;  %v2360_v27 = vld [vmem:[%s3554_s1 + $0x4] ss:$36 sps:$4 sm:$0xff]  }
  0x14   : > { %v2357_v26 = vld [vmem:[%s3554_s1 + $0x48] ss:$36 sps:$4 sm:$0xff]   ;;  %v2362_v28 = vld [vmem:[%s3554_s1 + $0x50] ss:$36 sps:$4 sm:$0xff]   ;;  %v2363_v30 = vld [vmem:[%s3554_s1] ss:$36 sps:$4 sm:$0xff]  }
  0x15   : > { %1238 = vmatpush1.bf16.msra.mxu0 %v2333_v9  ;;  %1361 = vmatpush1.bf16.msra.mxu1 %v2338_v12  ;;  %v2364_v29 = vld [vmem:[%s3554_s1 + $0xc] ss:$36 sps:$4 sm:$0xff]   ;;  %v2366_v31 = vld [vmem:[%s3554_s1 + $0x43c] ss:$36 sps:$4 sm:$0xff]   ;;  %v2370_v33 = vld [vmem:[%s3554_s1 + $0x444] ss:$36 sps:$4 sm:$0xff]  }
  0x16   : > { %1239 = vmatprep.subr.bf16.mxu0 %v2336_v11  ;;  %1362 = vmatprep.subr.bf16.mxu1 %v2340_v13  ;;  %v2368_v32 = vld [vmem:[%s3554_s1 + $0x8] ss:$36 sps:$4 sm:$0xff]   ;;  %v2369_v34 = vld [vmem:[%s3554_s1 + $0x438] ss:$36 sps:$4 sm:$0xff]   ;;  %s3558_s20 = smov (!%p166_p3, %s165_s20), 35 }
  0x17   : > { %v2372_v35 = vld [vmem:[%s3554_s1 + $0x3f4] ss:$36 sps:$4 sm:$0xff]   ;;  %v2374_v36 = vld [vmem:[%s3554_s1 + $0x440] ss:$36 sps:$4 sm:$0xff]   ;;  %v2378_v39 = vld [vmem:[%s3554_s1 + $0x3ac] ss:$36 sps:$4 sm:$0xff]  }
  0x18   : > { %v2376_v37 = vld [vmem:[%s3554_s1 + $0x3fc] ss:$36 sps:$4 sm:$0xff]   ;;  %v2375_v38 = vld [vmem:[%s3554_s1 + $0x3f0] ss:$36 sps:$4 sm:$0xff]   ;;  %s2223_s19 = sshll.u32 %s3558_s20, 3  ;;  %s2310_s14 = smul.u32 72, %s3558_s20 }
  0x19   : > { %1240 = vmatpush1.bf16.msra.mxu0 %v2339_v14  ;;  %1363 = vmatpush1.bf16.msra.mxu1 %v2344_v16  ;;  %v2380_v40 = vld [vmem:[%s3554_s1 + $0x3f8] ss:$36 sps:$4 sm:$0xff]   ;;  %v2381_v42 = vld [vmem:[%s3554_s1 + $0x3a8] ss:$36 sps:$4 sm:$0xff]   ;;  %s2727_s13 = scalar_lea.vmem %s3553_s0, %s2223_s19  ;;  %v2386_v44 = vld [vmem:[%s3554_s1 + $0x3b0] ss:$36 sps:$4 sm:$0xff]  }
  0x1a   : > { %1241 = vmatprep.subr.bf16.mxu0 %v2342_v15  ;;  %1364 = vmatprep.subr.bf16.mxu1 %v2346_v17  ;;  %v2382_v41 = vld [vmem:[%s3554_s1 + $0x3b4] ss:$36 sps:$4 sm:$0xff]   ;;  %v2384_v43 = vld [vmem:[%s3554_s1 + $0x364] ss:$36 sps:$4 sm:$0xff]   ;;  %v2388_v45 = vld [vmem:[%s3554_s1 + $0x36c] ss:$36 sps:$4 sm:$0xff]   ;;  %s3200_s17 = scalar_lea.vmem %s3556_s3, %s2310_s14 }
  0x1b   : > { %v2739_v46 = vld [vmem:[%s2727_s13 + $0x4] ss:$8 sps:$4 sm:$0xff]   ;;  %v2390_v48 = vld [vmem:[%s3554_s1 + $0x31c] ss:$36 sps:$4 sm:$0xff]   ;;  %v2396_v52 = vld [vmem:[%s3554_s1 + $0x2d4] ss:$36 sps:$4 sm:$0xff]  }
  0x1c   : > { %v2387_v47 = vld [vmem:[%s3554_s1 + $0x360] ss:$36 sps:$4 sm:$0xff]   ;;  %1265 = vmatprep.mubr.bf16.mxu0 %v2739_v46  ;;  %v2392_v49 = vld [vmem:[%s3554_s1 + $0x368] ss:$36 sps:$4 sm:$0xff]   ;;  %1388 = vmatprep.mubr.bf16.mxu1 %v2739_v46  ;;  %v2393_v51 = vld [vmem:[%s3554_s1 + $0x318] ss:$36 sps:$4 sm:$0xff]  }
  0x1d   : > { %1242 = vmatpush1.bf16.msra.mxu0 %v2345_v18  ;;  %1365 = vmatpush1.bf16.msra.mxu1 %v2350_v20  ;;  %v2394_v50 = vld [vmem:[%s3554_s1 + $0x324] ss:$36 sps:$4 sm:$0xff]   ;;  %v2400_v54 = vld [vmem:[%s3554_s1 + $0x2dc] ss:$36 sps:$4 sm:$0xff]   ;;  %v2399_v55 = vld [vmem:[%s3554_s1 + $0x2d0] ss:$36 sps:$4 sm:$0xff]  }
  0x1e   : > { %1243 = vmatprep.subr.bf16.mxu0 %v2348_v19  ;;  %1366 = vmatprep.subr.bf16.mxu1 %v2352_v21  ;;  %v2398_v53 = vld [vmem:[%s3554_s1 + $0x320] ss:$36 sps:$4 sm:$0xff]   ;;  %v2402_v56 = vld [vmem:[%s3554_s1 + $0x28c] ss:$36 sps:$4 sm:$0xff]   ;;  %v2404_v57 = vld [vmem:[%s3554_s1 + $0x2d8] ss:$36 sps:$4 sm:$0xff]  }
  0x1f   : > { %v2406_v58 = vld [vmem:[%s3554_s1 + $0x294] ss:$36 sps:$4 sm:$0xff]   ;;  %v2405_v59 = vld [vmem:[%s3554_s1 + $0x288] ss:$36 sps:$4 sm:$0xff]   ;;  %v2411_v63 = vld [vmem:[%s3554_s1 + $0x240] ss:$36 sps:$4 sm:$0xff]  }
  0x20   : > { %v2408_v60 = vld [vmem:[%s3554_s1 + $0x244] ss:$36 sps:$4 sm:$0xff]   ;;  %v2410_v61 = vld [vmem:[%s3554_s1 + $0x290] ss:$36 sps:$4 sm:$0xff]   ;;  %v2432_v11 = vld [vmem:[%s3554_s1 + $0x17c] ss:$36 sps:$4 sm:$0xff]  }
  0x21   : > { %1244 = vmatpush1.bf16.msra.mxu0 %v2351_v22  ;;  %1367 = vmatpush1.bf16.msra.mxu1 %v2356_v24  ;;  %v2414_v62 = vld [vmem:[%s3554_s1 + $0x24c] ss:$36 sps:$4 sm:$0xff]   ;;  %v2801_v2 = vld [vmem:[%s2727_s13] ss:$8 sps:$4 sm:$0xff]   ;;  %v2429_v3 = vld [vmem:[%s3554_s1 + $0x214] ss:$36 sps:$4 sm:$0xff]  }
  0x22   : > { %1245 = vmatprep.subr.bf16.mxu0 %v2354_v23  ;;  %1368 = vmatprep.subr.bf16.mxu1 %v2358_v25  ;;  %v2420_v0 = vld [vmem:[%s3554_s1 + $0x20c] ss:$36 sps:$4 sm:$0xff]   ;;  %v2810_v5 = vld [vmem:[%s2727_s13 + $0x14] ss:$8 sps:$4 sm:$0xff]   ;;  %v2423_v6 = vld [vmem:[%s3554_s1 + $0x1c4] ss:$36 sps:$4 sm:$0xff]  }
  0x23   : > { %v2417_v1 = vld [vmem:[%s3554_s1 + $0x248] ss:$36 sps:$4 sm:$0xff]   ;;  %v2427_v7 = vld [vmem:[%s3554_s1 + $0x210] ss:$36 sps:$4 sm:$0xff]   ;;  %v2421_v9 = vld [vmem:[%s3554_s1 + $0x1c0] ss:$36 sps:$4 sm:$0xff]  }
  0x24   : > { %v2418_v4 = vld [vmem:[%s3554_s1 + $0x208] ss:$36 sps:$4 sm:$0xff]   ;;  %v2828_v10 = vld [vmem:[%s2727_s13 + $0x10] ss:$8 sps:$4 sm:$0xff]   ;;  %v2442_v17 = vld [vmem:[%s3554_s1 + $0x180] ss:$36 sps:$4 sm:$0xff]  }
  0x25   : > { %1246 = vmatpush1.bf16.msra.mxu0 %v2357_v26  ;;  %1369 = vmatpush1.bf16.msra.mxu1 %v2362_v28  ;;  %v2435_v8 = vld [vmem:[%s3554_s1 + $0x1cc] ss:$36 sps:$4 sm:$0xff]   ;;  %v2430_v13 = vld [vmem:[%s3554_s1 + $0x178] ss:$36 sps:$4 sm:$0xff]   ;;  %v2444_v14 = vld [vmem:[%s3554_s1 + $0x184] ss:$36 sps:$4 sm:$0xff]  }
  0x26   : > { %1247 = vmatprep.subr.bf16.mxu0 %v2360_v27  ;;  %1370 = vmatprep.subr.bf16.mxu1 %v2364_v29  ;;  %v2433_v12 = vld [vmem:[%s3554_s1 + $0x1c8] ss:$36 sps:$4 sm:$0xff]   ;;  %v2438_v16 = vld [vmem:[%s3554_s1 + $0x134] ss:$36 sps:$4 sm:$0xff]   ;;  %v2450_v18 = vld [vmem:[%s3554_s1 + $0x13c] ss:$36 sps:$4 sm:$0xff]  }
  0x27   : > { %v2844_v15 = vld [vmem:[%s2727_s13 + $0x24] ss:$8 sps:$4 sm:$0xff]   ;;  %v2436_v19 = vld [vmem:[%s3554_s1 + $0x130] ss:$36 sps:$4 sm:$0xff]   ;;  %v2862_v20 = vld [vmem:[%s2727_s13 + $0x20] ss:$8 sps:$4 sm:$0xff]  }
  0x28   : > { %v2447_v21 = vld [vmem:[%s3554_s1 + $0xec] ss:$36 sps:$4 sm:$0xff]   ;;  %v2448_v22 = vld [vmem:[%s3554_s1 + $0x138] ss:$36 sps:$4 sm:$0xff]   ;;  %v2455_v26 = vld [vmem:[%s3554_s1 + $0xa4] ss:$36 sps:$4 sm:$0xff]  }
  0x29   : > { %1248 = vmatpush1.bf16.msra.mxu0 %v2363_v30  ;;  %1371 = vmatpush1.bf16.msra.mxu1 %v2368_v32  ;;  %v2459_v23 = vld [vmem:[%s3554_s1 + $0xf4] ss:$36 sps:$4 sm:$0xff]   ;;  %v2445_v24 = vld [vmem:[%s3554_s1 + $0xe8] ss:$36 sps:$4 sm:$0xff]   ;;  %v2453_v29 = vld [vmem:[%s3554_s1 + $0xa0] ss:$36 sps:$4 sm:$0xff]  }
  0x2a   : > { %1249 = vmatprep.subr.bf16.mxu0 %v2366_v31  ;;  %1372 = vmatprep.subr.bf16.mxu1 %v2370_v33  ;;  %v2878_v25 = vld [vmem:[%s2727_s13 + $0x34] ss:$8 sps:$4 sm:$0xff]   ;;  %v2467_v28 = vld [vmem:[%s3554_s1 + $0xac] ss:$36 sps:$4 sm:$0xff]   ;;  %v2474_v33 = vld [vmem:[%s3554_s1 + $0x64] ss:$36 sps:$4 sm:$0xff]  }
  0x2b   : > { %v2457_v27 = vld [vmem:[%s3554_s1 + $0xf0] ss:$36 sps:$4 sm:$0xff]   ;;  %v2462_v30 = vld [vmem:[%s3554_s1 + $0x5c] ss:$36 sps:$4 sm:$0xff]   ;;  %v2465_v31 = vld [vmem:[%s3554_s1 + $0xa8] ss:$36 sps:$4 sm:$0xff]  }
  0x2c   : > { %v2903_v32 = vld [vmem:[%s2727_s13 + $0x30] ss:$8 sps:$4 sm:$0xff]  }
  0x2d   : > { %1250 = vmatpush2.bf16.msra.mxu0 %v2369_v34  ;;  %1373 = vmatpush2.bf16.msra.mxu1 %v2374_v36  ;;  %v2460_v34 = vld [vmem:[%s3554_s1 + $0x58] ss:$36 sps:$4 sm:$0xff]  }
  0x2e   : > { %1251 = vmatprep.subr.bf16.mxu0 %v2372_v35  ;;  %1374 = vmatprep.subr.bf16.mxu1 %v2376_v37  ;;  %v2912_v35 = vld [vmem:[%s2727_s13 + $0x44] ss:$8 sps:$4 sm:$0xff]   ;;  %v2471_v36 = vld [vmem:[%s3554_s1 + $0x14] ss:$36 sps:$4 sm:$0xff]  }
  0x2f   : > { %v2472_v37 = vld [vmem:[%s3554_s1 + $0x60] ss:$36 sps:$4 sm:$0xff]  }
  0x31   : > { %1252 = vmatpush2.bf16.msra.mxu0 %v2375_v38  ;;  %1375 = vmatpush2.bf16.msra.mxu1 %v2380_v40  ;;  %v2482_v38 = vld [vmem:[%s3554_s1 + $0x1c] ss:$36 sps:$4 sm:$0xff]   ;;  %v2477_v40 = vld [vmem:[%s3554_s1 + $0x44c] ss:$36 sps:$4 sm:$0xff]  }
  0x32   : > { %1253 = vmatprep.subr.bf16.mxu0 %v2378_v39  ;;  %1376 = vmatprep.subr.bf16.mxu1 %v2382_v41  ;;  %v2469_v39 = vld [vmem:[%s3554_s1 + $0x10] ss:$36 sps:$4 sm:$0xff]   ;;  %v2480_v41 = vld [vmem:[%s3554_s1 + $0x18] ss:$36 sps:$4 sm:$0xff]  }
  0x35   : > { %1254 = vmatpush2.bf16.msra.mxu0 %v2381_v42  ;;  %1377 = vmatpush2.bf16.msra.mxu1 %v2386_v44  ;;  %v2937_v42 = vld [vmem:[%s2727_s13 + $0x40] ss:$8 sps:$4 sm:$0xff]  }
  0x36   : > { %1255 = vmatprep.subr.bf16.mxu0 %v2384_v43  ;;  %1378 = vmatprep.subr.bf16.mxu1 %v2388_v45  ;;  %v2489_v43 = vld [vmem:[%s3554_s1 + $0x454] ss:$36 sps:$4 sm:$0xff]   ;;  %v2475_v44 = vld [vmem:[%s3554_s1 + $0x448] ss:$36 sps:$4 sm:$0xff]  }
  0x37   : > { %v2946_v45 = vld [vmem:[%s2727_s13 + $0x54] ss:$8 sps:$4 sm:$0xff]  }
  0x39   : > { %1256 = vmatpush2.bf16.msra.mxu0 %v2387_v47  ;;  %1379 = vmatpush2.bf16.msra.mxu1 %v2392_v49  ;;  %v2486_v47 = vld [vmem:[%s3554_s1 + $0x404] ss:$36 sps:$4 sm:$0xff]   ;;  %v2497_v49 = vld [vmem:[%s3554_s1 + $0x40c] ss:$36 sps:$4 sm:$0xff]  }
  0x3a   : > { %1257 = vmatprep.subr.bf16.mxu0 %v2390_v48  ;;  %1380 = vmatprep.subr.bf16.mxu1 %v2394_v50  ;;  %v2487_v48 = vld [vmem:[%s3554_s1 + $0x450] ss:$36 sps:$4 sm:$0xff]   ;;  %v2484_v50 = vld [vmem:[%s3554_s1 + $0x400] ss:$36 sps:$4 sm:$0xff]  }
  0x3d   : > { %1258 = vmatpush2.bf16.msra.mxu0 %v2393_v51  ;;  %1381 = vmatpush2.bf16.msra.mxu1 %v2398_v53  ;;  %v2964_v51 = vld [vmem:[%s2727_s13 + $0x50] ss:$8 sps:$4 sm:$0xff]  }
  0x3e   : > { %1259 = vmatprep.subr.bf16.mxu0 %v2396_v52  ;;  %1382 = vmatprep.subr.bf16.mxu1 %v2400_v54  ;;  %v2492_v52 = vld [vmem:[%s3554_s1 + $0x3bc] ss:$36 sps:$4 sm:$0xff]   ;;  %v2495_v54 = vld [vmem:[%s3554_s1 + $0x408] ss:$36 sps:$4 sm:$0xff]  }
  0x3f   : > { %v2490_v53 = vld [vmem:[%s3554_s1 + $0x3b8] ss:$36 sps:$4 sm:$0xff]  }
  0x41   : > { %1260 = vmatpush2.bf16.msra.mxu0 %v2399_v55  ;;  %1383 = vmatpush2.bf16.msra.mxu1 %v2404_v57  ;;  %v2504_v55 = vld [vmem:[%s3554_s1 + $0x3c4] ss:$36 sps:$4 sm:$0xff]   ;;  %v2501_v57 = vld [vmem:[%s3554_s1 + $0x374] ss:$36 sps:$4 sm:$0xff]  }
  0x42   : > { %1261 = vmatprep.subr.bf16.mxu0 %v2402_v56  ;;  %1384 = vmatprep.subr.bf16.mxu1 %v2406_v58  ;;  %v2980_v56 = vld [vmem:[%s2727_s13 + $0x64] ss:$8 sps:$4 sm:$0xff]  }
  0x43   : > { %v2502_v58 = vld [vmem:[%s3554_s1 + $0x3c0] ss:$36 sps:$4 sm:$0xff]  }
  0x45   : > { %1262 = vmatpush2.bf16.msra.mxu0 %v2405_v59  ;;  %1385 = vmatpush2.bf16.msra.mxu1 %v2410_v61  ;;  %v2512_v59 = vld [vmem:[%s3554_s1 + $0x37c] ss:$36 sps:$4 sm:$0xff]  }
  0x46   : > { %1263 = vmatprep.subr.bf16.mxu0 %v2408_v60  ;;  %1386 = vmatprep.subr.bf16.mxu1 %v2414_v62  ;;  %v2499_v60 = vld [vmem:[%s3554_s1 + $0x370] ss:$36 sps:$4 sm:$0xff]   ;;  %v2998_v61 = vld [vmem:[%s2727_s13 + $0x60] ss:$8 sps:$4 sm:$0xff]  }
  0x47   : > { %v2507_v62 = vld [vmem:[%s3554_s1 + $0x32c] ss:$36 sps:$4 sm:$0xff]  }
  0x49   : > { %1264 = vmatpush2.bf16.msra.mxu0 %v2411_v63  ;;  %1387 = vmatpush2.bf16.msra.mxu1 %v2417_v1  ;;  %v2505_v63 = vld [vmem:[%s3554_s1 + $0x328] ss:$36 sps:$4 sm:$0xff]   ;;  %v2519_v1 = vld [vmem:[%s3554_s1 + $0x334] ss:$36 sps:$4 sm:$0xff]  }
  0x4a   : > { %1479 = vmatprep.subr.bf16.mxu0 %v2420_v0  ;;  %1602 = vmatprep.subr.bf16.mxu1 %v2429_v3  ;;  %v2510_v0 = vld [vmem:[%s3554_s1 + $0x378] ss:$36 sps:$4 sm:$0xff]  }
  0x4b   : > { %v3014_v3 = vld [vmem:[%s2727_s13 + $0x74] ss:$8 sps:$4 sm:$0xff]  }
  0x4c   : > { %1266 = vmatmul.mubr.bf16.vlgmr.msra.gmra.mxu0 %v2801_v2  ;;  %1389 = vmatmul.mubr.bf16.vlgmr.msra.gmra.mxu1 %v2801_v2 }
  0x4d   : > { %1480 = vmatpush1.bf16.msra.mxu0 %v2418_v4  ;;  %1275 = vmatprep.mubr.bf16.mxu0 %v2810_v5  ;;  %v2516_v4 = vld [vmem:[%s3554_s1 + $0x2e4] ss:$36 sps:$4 sm:$0xff]  }
  0x4e   : > { %1481 = vmatprep.subr.bf16.mxu0 %v2423_v6  ;;  %1603 = vmatpush1.bf16.msra.mxu1 %v2427_v7  ;;  %v2517_v6 = vld [vmem:[%s3554_s1 + $0x330] ss:$36 sps:$4 sm:$0xff]  }
  0x4f   : > { %1398 = vmatprep.mubr.bf16.mxu1 %v2810_v5  ;;  %1604 = vmatprep.subr.bf16.mxu1 %v2435_v8  ;;  %v2527_v7 = vld [vmem:[%s3554_s1 + $0x2ec] ss:$36 sps:$4 sm:$0xff]   ;;  %v2514_v8 = vld [vmem:[%s3554_s1 + $0x2e0] ss:$36 sps:$4 sm:$0xff]  }
  0x51   : > { %1482 = vmatpush1.bf16.msra.mxu0 %v2421_v9  ;;  %v2524_v9 = vld [vmem:[%s3554_s1 + $0x29c] ss:$36 sps:$4 sm:$0xff]  }
  0x52   : > { %1483 = vmatprep.subr.bf16.mxu0 %v2432_v11  ;;  %1605 = vmatpush1.bf16.msra.mxu1 %v2433_v12  ;;  %v2525_v11 = vld [vmem:[%s3554_s1 + $0x2e8] ss:$36 sps:$4 sm:$0xff]   ;;  %v3039_v12 = vld [vmem:[%s2727_s13 + $0x70] ss:$8 sps:$4 sm:$0xff]  }
  0x53   : > { %1606 = vmatprep.subr.bf16.mxu1 %v2444_v14  ;;  %v3045_v14 = vld [vmem:[%s2727_s13 + $0x84] ss:$8 sps:$4 sm:$0xff]  }
  0x54   : > { %1276 = vmatmul.mubr.bf16.gmra.mxu0 %v2828_v10  ;;  %1399 = vmatmul.mubr.bf16.gmra.mxu1 %v2828_v10 }
  0x55   : > { %1484 = vmatpush1.bf16.msra.mxu0 %v2430_v13  ;;  %1285 = vmatprep.mubr.bf16.mxu0 %v2844_v15  ;;  %v2531_v13 = vld [vmem:[%s3554_s1 + $0x2a4] ss:$36 sps:$4 sm:$0xff]  }
  0x56   : > { %1485 = vmatprep.subr.bf16.mxu0 %v2438_v16  ;;  %1408 = vmatprep.mubr.bf16.mxu1 %v2844_v15  ;;  %v2522_v16 = vld [vmem:[%s3554_s1 + $0x298] ss:$36 sps:$4 sm:$0xff]  }
  0x57   : > { %1607 = vmatpush1.bf16.msra.mxu1 %v2442_v17  ;;  %v2534_v17 = vld [vmem:[%s3554_s1 + $0x254] ss:$36 sps:$4 sm:$0xff]  }
  0x58   : > { %1608 = vmatprep.subr.bf16.mxu1 %v2450_v18  ;;  %v2529_v18 = vld [vmem:[%s3554_s1 + $0x2a0] ss:$36 sps:$4 sm:$0xff]  }
  0x59   : > { %1486 = vmatpush1.bf16.msra.mxu0 %v2436_v19  ;;  %v2537_v19 = vld [vmem:[%s3554_s1 + $0x25c] ss:$36 sps:$4 sm:$0xff]  }
  0x5a   : > { %1487 = vmatprep.subr.bf16.mxu0 %v2447_v21  ;;  %v2532_v21 = vld [vmem:[%s3554_s1 + $0x250] ss:$36 sps:$4 sm:$0xff]  }
  0x5b   : > { %1609 = vmatpush1.bf16.msra.mxu1 %v2448_v22  ;;  %v2538_v22 = vld [vmem:[%s3554_s1 + $0x458] ss:$36 sps:$4 sm:$0xff]  }
  0x5c   : > { %1286 = vmatmul.mubr.bf16.gmra.mxu0 %v2862_v20  ;;  %1610 = vmatprep.subr.bf16.mxu1 %v2459_v23  ;;  %v2535_v23 = vld [vmem:[%s3554_s1 + $0x258] ss:$36 sps:$4 sm:$0xff]  }
  0x5d   : > { %1488 = vmatpush1.bf16.msra.mxu0 %v2445_v24  ;;  %1295 = vmatprep.mubr.bf16.mxu0 %v2878_v25  ;;  %v3073_v24 = vld [vmem:[%s2727_s13 + $0x80] ss:$8 sps:$4 sm:$0xff]  }
  0x5e   : > { %1409 = vmatmul.mubr.bf16.gmra.mxu1 %v2862_v20  ;;  %1489 = vmatprep.subr.bf16.mxu0 %v2455_v26  ;;  %v2539_v26 = vld [vmem:[%s3554_s1 + $0x218] ss:$36 sps:$4 sm:$0xff]  }
  0x5f   : > { %1418 = vmatprep.mubr.bf16.mxu1 %v2878_v25  ;;  %1611 = vmatpush1.bf16.msra.mxu1 %v2457_v27  ;;  %v2540_v27 = vld [vmem:[%s3554_s1 + $0x410] ss:$36 sps:$4 sm:$0xff]  }
  0x60   : > { %1612 = vmatprep.subr.bf16.mxu1 %v2467_v28  ;;  %v2541_v28 = vld [vmem:[%s3554_s1 + $0x1d0] ss:$36 sps:$4 sm:$0xff]  }
  0x61   : > { %1490 = vmatpush1.bf16.msra.mxu0 %v2453_v29  ;;  %v2542_v29 = vld [vmem:[%s3554_s1 + $0x3c8] ss:$36 sps:$4 sm:$0xff]  }
  0x62   : > { %1491 = vmatprep.subr.bf16.mxu0 %v2462_v30  ;;  %v2543_v30 = vld [vmem:[%s3554_s1 + $0x188] ss:$36 sps:$4 sm:$0xff]  }
  0x63   : > { %1613 = vmatpush1.bf16.msra.mxu1 %v2465_v31  ;;  %v2544_v31 = vld [vmem:[%s3554_s1 + $0x380] ss:$36 sps:$4 sm:$0xff]  }
  0x64   : > { %1296 = vmatmul.mubr.bf16.gmra.mxu0 %v2903_v32  ;;  %1614 = vmatprep.subr.bf16.mxu1 %v2474_v33  ;;  %v2545_v33 = vld [vmem:[%s3554_s1 + $0x140] ss:$36 sps:$4 sm:$0xff]  }
  0x65   : > { %1492 = vmatpush1.bf16.msra.mxu0 %v2460_v34  ;;  %1305 = vmatprep.mubr.bf16.mxu0 %v2912_v35  ;;  %v2546_v34 = vld [vmem:[%s3554_s1 + $0x338] ss:$36 sps:$4 sm:$0xff]  }
  0x66   : > { %1419 = vmatmul.mubr.bf16.gmra.mxu1 %v2903_v32  ;;  %1493 = vmatprep.subr.bf16.mxu0 %v2471_v36  ;;  %v2547_v36 = vld [vmem:[%s3554_s1 + $0xf8] ss:$36 sps:$4 sm:$0xff]  }
  0x67   : > { %1428 = vmatprep.mubr.bf16.mxu1 %v2912_v35  ;;  %1615 = vmatpush1.bf16.msra.mxu1 %v2472_v37  ;;  %v2548_v37 = vld [vmem:[%s3554_s1 + $0x2f0] ss:$36 sps:$4 sm:$0xff]  }
  0x68   : > { %1616 = vmatprep.subr.bf16.mxu1 %v2482_v38  ;;  %v2549_v38 = vld [vmem:[%s3554_s1 + $0xb0] ss:$36 sps:$4 sm:$0xff]  }
  0x69   : > { %1494 = vmatpush1.bf16.msra.mxu0 %v2469_v39  ;;  %v2550_v39 = vld [vmem:[%s3554_s1 + $0x2a8] ss:$36 sps:$4 sm:$0xff]  }
  0x6a   : > { %1495 = vmatprep.subr.bf16.mxu0 %v2477_v40  ;;  %v2551_v40 = vld [vmem:[%s3554_s1 + $0x68] ss:$36 sps:$4 sm:$0xff]  }
  0x6b   : > { %1617 = vmatpush1.bf16.msra.mxu1 %v2480_v41  ;;  %v2552_v41 = vld [vmem:[%s3554_s1 + $0x260] ss:$36 sps:$4 sm:$0xff]  }
  0x6c   : > { %1306 = vmatmul.mubr.bf16.gmra.mxu0 %v2937_v42  ;;  %1618 = vmatprep.subr.bf16.mxu1 %v2489_v43  ;;  %v2553_v43 = vld [vmem:[%s3554_s1 + $0x20] ss:$36 sps:$4 sm:$0xff]  }
  0x6d   : > { %1496 = vmatpush2.bf16.msra.mxu0 %v2475_v44  ;;  %1315 = vmatprep.mubr.bf16.mxu0 %v2946_v45 }
  0x6e   : > { %1429 = vmatmul.mubr.bf16.gmra.mxu1 %v2937_v42  ;;  %1497 = vmatprep.subr.bf16.mxu0 %v2486_v47 }
  0x6f   : > { %1438 = vmatprep.mubr.bf16.mxu1 %v2946_v45  ;;  %1619 = vmatpush2.bf16.msra.mxu1 %v2487_v48 }
  0x70   : > { %1620 = vmatprep.subr.bf16.mxu1 %v2497_v49 }
  0x71   : > { %1498 = vmatpush2.bf16.msra.mxu0 %v2484_v50 }
  0x72   : > { %1499 = vmatprep.subr.bf16.mxu0 %v2492_v52 }
  0x73   : > { %1621 = vmatpush2.bf16.msra.mxu1 %v2495_v54 }
  0x74   : > { %1316 = vmatmul.mubr.bf16.gmra.mxu0 %v2964_v51  ;;  %1622 = vmatprep.subr.bf16.mxu1 %v2504_v55 }
  0x75   : > { %1500 = vmatpush2.bf16.msra.mxu0 %v2490_v53  ;;  %1325 = vmatprep.mubr.bf16.mxu0 %v2980_v56 }
  0x76   : > { %1439 = vmatmul.mubr.bf16.gmra.mxu1 %v2964_v51  ;;  %1501 = vmatprep.subr.bf16.mxu0 %v2501_v57 }
  0x77   : > { %1448 = vmatprep.mubr.bf16.mxu1 %v2980_v56  ;;  %1623 = vmatpush2.bf16.msra.mxu1 %v2502_v58 }
  0x78   : > { %1624 = vmatprep.subr.bf16.mxu1 %v2512_v59 }
  0x79   : > { %1502 = vmatpush2.bf16.msra.mxu0 %v2499_v60 }
  0x7a   : > { %1503 = vmatprep.subr.bf16.mxu0 %v2507_v62 }
  0x7b   : > { %1625 = vmatpush2.bf16.msra.mxu1 %v2510_v0 }
  0x7c   : > { %1326 = vmatmul.mubr.bf16.gmra.mxu0 %v2998_v61  ;;  %1626 = vmatprep.subr.bf16.mxu1 %v2519_v1 }
  0x7d   : > { %1335 = vmatprep.mubr.bf16.mxu0 %v3014_v3  ;;  %1504 = vmatpush2.bf16.msra.mxu0 %v2505_v63 }
  0x7e   : > { %1449 = vmatmul.mubr.bf16.gmra.mxu1 %v2998_v61  ;;  %1505 = vmatprep.subr.bf16.mxu0 %v2516_v4 }
  0x7f   : > { %1458 = vmatprep.mubr.bf16.mxu1 %v3014_v3  ;;  %1627 = vmatpush2.bf16.msra.mxu1 %v2517_v6 }
  0x80   : > { %1628 = vmatprep.subr.bf16.mxu1 %v2527_v7 }
  0x81   : > { %1506 = vmatpush2.bf16.msra.mxu0 %v2514_v8 }
  0x82   : > { %1507 = vmatprep.subr.bf16.mxu0 %v2524_v9 }
  0x83   : > { %1629 = vmatpush2.bf16.msra.mxu1 %v2525_v11 }
  0x84   : > { %1336 = vmatmul.mubr.bf16.gmra.mxu0 %v3039_v12  ;;  %1630 = vmatprep.subr.bf16.mxu1 %v2531_v13 }
  0x85   : > { %1345 = vmatprep.mubr.bf16.mxu0 %v3045_v14  ;;  %1508 = vmatpush2.bf16.msra.mxu0 %v2522_v16 }
  0x86   : > { %1459 = vmatmul.mubr.bf16.gmra.mxu1 %v3039_v12  ;;  %1509 = vmatprep.subr.bf16.mxu0 %v2534_v17 }
  0x87   : > { %1468 = vmatprep.mubr.bf16.mxu1 %v3045_v14  ;;  %1631 = vmatpush2.bf16.msra.mxu1 %v2529_v18 }
  0x88   : > { %1632 = vmatprep.subr.bf16.mxu1 %v2537_v19 }
  0x89   : > { %1510 = vmatpush2.bf16.msra.mxu0 %v2532_v21 }
  0x8a   : > { %2224 = vmatprep.subr.bf16.mxu0 %v2538_v22 }
  0x8b   : > { %1633 = vmatpush2.bf16.msra.mxu1 %v2535_v23 }
  0x8c   : > { %1346 = vmatmul.mubr.bf16.gmra.mxu0 %v3073_v24  ;;  %2294 = vmatprep.subr.bf16.mxu1 %v2538_v22 }
  0x8d   : > { %1511 = vmatprep.mubr.bf16.mxu0 %v2739_v46 }
  0x8e   : > { %1469 = vmatmul.mubr.bf16.gmra.mxu1 %v3073_v24 }
  0x8f   : > { %1634 = vmatprep.mubr.bf16.mxu1 %v2739_v46 }
  0x94   : > { %1512 = vmatmul.mubr.bf16.vlgmr.msra.gmra.mxu0 %v2801_v2 }
  0x95   : > { %2225 = vmatpush3.bf16.msra.mxu0 %v2539_v26  ;;  %1521 = vmatprep.mubr.bf16.mxu0 %v2810_v5 }
  0x96   : > { %1635 = vmatmul.mubr.bf16.vlgmr.msra.gmra.mxu1 %v2801_v2  ;;  %2226 = vmatprep.subr.bf16.mxu0 %v2540_v27 }
  0x97   : > { %2302 = vmatpush3.bf16.msra.mxu1 %v2539_v26  ;;  %1644 = vmatprep.mubr.bf16.mxu1 %v2810_v5 }
  0x98   : > { %2295 = vmatprep.subr.bf16.mxu1 %v2540_v27 }
  0x99   : > { %2227 = vmatpush3.bf16.msra.mxu0 %v2541_v28 }
  0x9a   : > { %2228 = vmatprep.subr.bf16.mxu0 %v2542_v29 }
  0x9b   : > { %2303 = vmatpush3.bf16.msra.mxu1 %v2541_v28 }
  0x9c   : > { %1522 = vmatmul.mubr.bf16.gmra.mxu0 %v2828_v10  ;;  %2296 = vmatprep.subr.bf16.mxu1 %v2542_v29 }
  0x9d   : > { %1531 = vmatprep.mubr.bf16.mxu0 %v2844_v15  ;;  %2229 = vmatpush3.bf16.msra.mxu0 %v2543_v30 }
  0x9e   : > { %1645 = vmatmul.mubr.bf16.gmra.mxu1 %v2828_v10  ;;  %2230 = vmatprep.subr.bf16.mxu0 %v2544_v31 }
  0x9f   : > { %1654 = vmatprep.mubr.bf16.mxu1 %v2844_v15  ;;  %2304 = vmatpush3.bf16.msra.mxu1 %v2543_v30 }
  0xa0   : > { %2297 = vmatprep.subr.bf16.mxu1 %v2544_v31 }
  0xa1   : > { %2231 = vmatpush3.bf16.msra.mxu0 %v2545_v33 }
  0xa2   : > { %2232 = vmatprep.subr.bf16.mxu0 %v2546_v34 }
  0xa3   : > { %2305 = vmatpush3.bf16.msra.mxu1 %v2545_v33 }
  0xa4   : > { %1532 = vmatmul.mubr.bf16.gmra.mxu0 %v2862_v20  ;;  %2298 = vmatprep.subr.bf16.mxu1 %v2546_v34 }
  0xa5   : > { %1541 = vmatprep.mubr.bf16.mxu0 %v2878_v25  ;;  %2233 = vmatpush3.bf16.msra.mxu0 %v2547_v36 }
  0xa6   : > { %1655 = vmatmul.mubr.bf16.gmra.mxu1 %v2862_v20  ;;  %2234 = vmatprep.subr.bf16.mxu0 %v2548_v37 }
  0xa7   : > { %1664 = vmatprep.mubr.bf16.mxu1 %v2878_v25  ;;  %2306 = vmatpush3.bf16.msra.mxu1 %v2547_v36 }
  0xa8   : > { %2299 = vmatprep.subr.bf16.mxu1 %v2548_v37 }
  0xa9   : > { %2235 = vmatpush3.bf16.msra.mxu0 %v2549_v38 }
  0xaa   : > { %2236 = vmatprep.subr.bf16.mxu0 %v2550_v39 }
  0xab   : > { %2307 = vmatpush3.bf16.msra.mxu1 %v2549_v38 }
  0xac   : > { %1542 = vmatmul.mubr.bf16.gmra.mxu0 %v2903_v32  ;;  %2300 = vmatprep.subr.bf16.mxu1 %v2550_v39 }
  0xad   : > { %1551 = vmatprep.mubr.bf16.mxu0 %v2912_v35  ;;  %2237 = vmatpush3.bf16.msra.mxu0 %v2551_v40 }
  0xae   : > { %1665 = vmatmul.mubr.bf16.gmra.mxu1 %v2903_v32  ;;  %2238 = vmatprep.subr.bf16.mxu0 %v2552_v41 }
  0xaf   : > { %1674 = vmatprep.mubr.bf16.mxu1 %v2912_v35  ;;  %2308 = vmatpush3.bf16.msra.mxu1 %v2551_v40 }
  0xb0   : > { %2301 = vmatprep.subr.bf16.mxu1 %v2552_v41 }
  0xb1   : > { %2239 = vmatpush3.bf16.msra.mxu0 %v2553_v43 }
  0xb3   : > { %2309 = vmatpush3.bf16.msra.mxu1 %v2553_v43 }
  0xb4   : > { %1552 = vmatmul.mubr.bf16.gmra.mxu0 %v2937_v42 }
  0xb5   : > { %1561 = vmatprep.mubr.bf16.mxu0 %v2946_v45 }
  0xb6   : > { %1675 = vmatmul.mubr.bf16.gmra.mxu1 %v2937_v42 }
  0xb7   : > { %1684 = vmatprep.mubr.bf16.mxu1 %v2946_v45 }
  0xbc   : > { %1562 = vmatmul.mubr.bf16.gmra.mxu0 %v2964_v51 }
  0xbd   : > { %1571 = vmatprep.mubr.bf16.mxu0 %v2980_v56 }
  0xbe   : > { %1685 = vmatmul.mubr.bf16.gmra.mxu1 %v2964_v51 }
  0xbf   : > { %1694 = vmatprep.mubr.bf16.mxu1 %v2980_v56 }
  0xc4   : > { %1572 = vmatmul.mubr.bf16.gmra.mxu0 %v2998_v61 }
  0xc5   : > { %1581 = vmatprep.mubr.bf16.mxu0 %v3014_v3 }
  0xc6   : > { %1695 = vmatmul.mubr.bf16.gmra.mxu1 %v2998_v61 }
  0xc7   : > { %1704 = vmatprep.mubr.bf16.mxu1 %v3014_v3 }
  0xcc   : > { %1582 = vmatmul.mubr.bf16.gmra.mxu0 %v3039_v12 }
  0xcd   : > { %1591 = vmatprep.mubr.bf16.mxu0 %v3045_v14 }
  0xce   : > { %1705 = vmatmul.mubr.bf16.gmra.mxu1 %v3039_v12 }
  0xcf   : > { %1714 = vmatprep.mubr.bf16.mxu1 %v3045_v14 }
  0xd4   : > { %1592 = vmatmul.mubr.bf16.gmra.mxu0 %v3073_v24 }
  0xd5   : > { %1757 = vmatprep.mubr.bf16.mxu0 %v2739_v46  ;;  %v362_v46 = vlaneseq }
  0xd6   : > { %1715 = vmatmul.mubr.bf16.gmra.mxu1 %v3073_v24 }
  0xd7   : > { %1797 = vmatprep.mubr.bf16.mxu1 %v2946_v45 }
  0xdc   : > { %1758 = vmatmul.mubr.bf16.vlgmr.msra.gmra.mxu0 %v2801_v2  ;;  %v3176_v2 = vshrl.u32 %v362_v46, 7 }
  0xdd   : > { %1765 = vmatprep.mubr.bf16.mxu0 %v2810_v5 }
  0xde   : > { %1798 = vmatmul.mubr.bf16.vlgmr.msra.gmra.mxu1 %v2964_v51  ;;  %v364_v5 = vsub.s32 0, %v3176_v2 }
  0xdf   : > { %1805 = vmatprep.mubr.bf16.mxu1 %v2980_v56 }
  0xe4   : > { %1766 = vmatmul.mubr.bf16.gmra.mxu0 %v2828_v10  ;;  %v3182_v10 = vld [vmem:[%s3555_s2] sm:$0xff] }
  0xe5   : > { %1773 = vmatprep.mubr.bf16.mxu0 %v2844_v15  ;;  %v368_v15 = vsub.s32 1, %v3176_v2 }
  0xe6   : > { %1806 = vmatmul.mubr.bf16.gmra.mxu1 %v2998_v61 }
  0xe7   : > { %1813 = vmatprep.mubr.bf16.mxu1 %v3014_v3 }
  0xec   : > { %1774 = vmatmul.mubr.bf16.gmra.mxu0 %v2862_v20  ;;  %v372_v20 = vsub.s32 2, %v3176_v2 }
  0xed   : > { %1781 = vmatprep.mubr.bf16.mxu0 %v2878_v25  ;;  %v3188_v25 = vrot.slane %v3182_v10, %v364_v5 }
  0xee   : > { %1814 = vmatmul.mubr.bf16.gmra.mxu1 %v3039_v12 }
  0xef   : > { %1821 = vmatprep.mubr.bf16.mxu1 %v3045_v14 }
  0xf4   : > { %1782 = vmatmul.mubr.bf16.gmra.mxu0 %v2903_v32  ;;  %v376_v32 = vsub.s32 3, %v3176_v2 }
  0xf5   : > { %1789 = vmatprep.mubr.bf16.mxu0 %v2912_v35  ;;  %v3192_v35 = vrot.slane %v3182_v10, %v368_v15 }
  0xf6   : > { %1822 = vmatmul.mubr.bf16.gmra.mxu1 %v3073_v24  ;;  %v3204_v47 = vrot.slane %v3182_v10, %v376_v32 }
  0xfc   : > { %1790 = vmatmul.mubr.bf16.gmra.mxu0 %v2937_v42  ;;  %v3195_v42 = vrot.slane %v3182_v10, %v372_v20 }
 0x10c   : > { %v1267_v44 = vpop.f32.mrf.mxu0  ;;  %v1390_v49 = vpop.f32.mrf.mxu1 }
 0x10d   : > { %v1268_v45 = vadd.f32 %v1267_v44, %v3188_v25  ;;  %v1391_v51 = vadd.f32 %v1390_v49, %v3195_v42 }
 0x10e   : > { %v1269_v48 = vpop.f32.mrf.mxu0  ;;  %v1392_v53 = vpop.f32.mrf.mxu1 }
 0x10f   : > { %1830 = vst [vmem:[%s3200_s17] sm:$0xff] %v1268_v45  ;;  %v1270_v50 = vadd.f32 %v1269_v48, %v3192_v35  ;;  %1832 = vst [vmem:[%s3200_s17 + $0x10] sm:$0xff] %v1391_v51  ;;  %v1393_v55 = vadd.f32 %v1392_v53, %v3204_v47 }
 0x110   : > { %v1271_v52 = vpop.f32.mrf.mxu0  ;;  %v1394_v57 = vpop.f32.mrf.mxu1 }
 0x111   : > { %1831 = vst [vmem:[%s3200_s17 + $0x8] sm:$0xff] %v1270_v50  ;;  %v1272_v54 = vadd.f32 %v1271_v52, %v3188_v25  ;;  %1833 = vst [vmem:[%s3200_s17 + $0x18] sm:$0xff] %v1393_v55  ;;  %v1395_v59 = vadd.f32 %v1394_v57, %v3195_v42 }
 0x112   : > { %v1273_v56 = vpop.f32.mrf.mxu0  ;;  %v1396_v61 = vpop.f32.mrf.mxu1 }
 0x113   : > { %1839 = vst [vmem:[%s3200_s17 + $0x48] sm:$0xff] %v1272_v54  ;;  %v1274_v58 = vadd.f32 %v1273_v56, %v3192_v35  ;;  %1841 = vst [vmem:[%s3200_s17 + $0x58] sm:$0xff] %v1395_v59  ;;  %v1397_v63 = vadd.f32 %v1396_v61, %v3204_v47 }
 0x114   : > { %v1277_v60 = vpop.f32.mrf.mxu0  ;;  %v1400_v1 = vpop.f32.mrf.mxu1 }
 0x115   : > { %1840 = vst [vmem:[%s3200_s17 + $0x50] sm:$0xff] %v1274_v58  ;;  %v1278_v62 = vadd.f32 %v1277_v60, %v3188_v25  ;;  %1842 = vst [vmem:[%s3200_s17 + $0x60] sm:$0xff] %v1397_v63  ;;  %v1401_v4 = vadd.f32 %v1400_v1, %v3195_v42 }
 0x116   : > { %v1279_v0 = vpop.f32.mrf.mxu0  ;;  %v1402_v7 = vpop.f32.mrf.mxu1 }
 0x117   : > { %1848 = vst [vmem:[%s3200_s17 + $0x90] sm:$0xff] %v1278_v62  ;;  %v1280_v3 = vadd.f32 %v1279_v0, %v3192_v35  ;;  %1850 = vst [vmem:[%s3200_s17 + $0xa0] sm:$0xff] %v1401_v4  ;;  %v1403_v9 = vadd.f32 %v1402_v7, %v3204_v47 }
 0x118   : > { %v1281_v6 = vpop.f32.mrf.mxu0  ;;  %v1404_v12 = vpop.f32.mrf.mxu1 }
 0x119   : > { %1849 = vst [vmem:[%s3200_s17 + $0x98] sm:$0xff] %v1280_v3  ;;  %v1282_v8 = vadd.f32 %v1281_v6, %v3188_v25  ;;  %1851 = vst [vmem:[%s3200_s17 + $0xa8] sm:$0xff] %v1403_v9  ;;  %v1405_v14 = vadd.f32 %v1404_v12, %v3195_v42 }
 0x11a   : > { %v1283_v11 = vpop.f32.mrf.mxu0  ;;  %v1406_v17 = vpop.f32.mrf.mxu1 }
 0x11b   : > { %1857 = vst [vmem:[%s3200_s17 + $0xd8] sm:$0xff] %v1282_v8  ;;  %v1284_v13 = vadd.f32 %v1283_v11, %v3192_v35  ;;  %1859 = vst [vmem:[%s3200_s17 + $0xe8] sm:$0xff] %v1405_v14  ;;  %v1407_v19 = vadd.f32 %v1406_v17, %v3204_v47 }
 0x11c   : > { %v1287_v16 = vpop.f32.mrf.mxu0 }
 0x11d   : > { %1858 = vst [vmem:[%s3200_s17 + $0xe0] sm:$0xff] %v1284_v13  ;;  %v1288_v18 = vadd.f32 %v1287_v16, %v3188_v25  ;;  %1860 = vst [vmem:[%s3200_s17 + $0xf0] sm:$0xff] %v1407_v19 }
 0x11e   : > { %v1289_v21 = vpop.f32.mrf.mxu0  ;;  %v1410_v22 = vpop.f32.mrf.mxu1 }
 0x11f   : > { %1866 = vst [vmem:[%s3200_s17 + $0x120] sm:$0xff] %v1288_v18  ;;  %v1290_v23 = vadd.f32 %v1289_v21, %v3192_v35  ;;  %v1411_v24 = vadd.f32 %v1410_v22, %v3195_v42 }
 0x120   : > { %v1291_v26 = vpop.f32.mrf.mxu0  ;;  %v1412_v27 = vpop.f32.mrf.mxu1 }
 0x121   : > { %1867 = vst [vmem:[%s3200_s17 + $0x128] sm:$0xff] %v1290_v23  ;;  %1868 = vst [vmem:[%s3200_s17 + $0x130] sm:$0xff] %v1411_v24  ;;  %v1292_v28 = vadd.f32 %v1291_v26, %v3188_v25  ;;  %v1413_v29 = vadd.f32 %v1412_v27, %v3204_v47 }
 0x122   : > { %v1293_v30 = vpop.f32.mrf.mxu0  ;;  %v1414_v31 = vpop.f32.mrf.mxu1 }
 0x123   : > { %1875 = vst [vmem:[%s3200_s17 + $0x168] sm:$0xff] %v1292_v28  ;;  %1869 = vst [vmem:[%s3200_s17 + $0x138] sm:$0xff] %v1413_v29  ;;  %v1294_v33 = vadd.f32 %v1293_v30, %v3192_v35  ;;  %v1415_v34 = vadd.f32 %v1414_v31, %v3195_v42 }
 0x124   : > { %v1297_v36 = vpop.f32.mrf.mxu0  ;;  %v1416_v37 = vpop.f32.mrf.mxu1 }
 0x125   : > { %1876 = vst [vmem:[%s3200_s17 + $0x170] sm:$0xff] %v1294_v33  ;;  %1877 = vst [vmem:[%s3200_s17 + $0x178] sm:$0xff] %v1415_v34  ;;  %v1298_v38 = vadd.f32 %v1297_v36, %v3188_v25  ;;  %v1417_v39 = vadd.f32 %v1416_v37, %v3204_v47 }
 0x126   : > { %v1299_v40 = vpop.f32.mrf.mxu0  ;;  %v1420_v41 = vpop.f32.mrf.mxu1 }
 0x127   : > { %1884 = vst [vmem:[%s3200_s17 + $0x1b0] sm:$0xff] %v1298_v38  ;;  %1878 = vst [vmem:[%s3200_s17 + $0x180] sm:$0xff] %v1417_v39  ;;  %v1300_v43 = vadd.f32 %v1299_v40, %v3192_v35  ;;  %v1421_v46 = vadd.f32 %v1420_v41, %v3195_v42 }
 0x128   : > { %v1301_v5 = vpop.f32.mrf.mxu0  ;;  %v1422_v15 = vpop.f32.mrf.mxu1 }
 0x129   : > { %1885 = vst [vmem:[%s3200_s17 + $0x1b8] sm:$0xff] %v1300_v43  ;;  %1886 = vst [vmem:[%s3200_s17 + $0x1c0] sm:$0xff] %v1421_v46  ;;  %v1302_v20 = vadd.f32 %v1301_v5, %v3188_v25  ;;  %v1423_v32 = vadd.f32 %v1422_v15, %v3204_v47 }
 0x12a   : > { %v1303_v44 = vpop.f32.mrf.mxu0  ;;  %v1424_v45 = vpop.f32.mrf.mxu1 }
 0x12b   : > { %1893 = vst [vmem:[%s3200_s17 + $0x1f8] sm:$0xff] %v1302_v20  ;;  %1887 = vst [vmem:[%s3200_s17 + $0x1c8] sm:$0xff] %v1423_v32  ;;  %v1304_v48 = vadd.f32 %v1303_v44, %v3192_v35  ;;  %v1425_v49 = vadd.f32 %v1424_v45, %v3195_v42 }
 0x12c   : > { %v1307_v50 = vpop.f32.mrf.mxu0  ;;  %v1426_v51 = vpop.f32.mrf.mxu1 }
 0x12d   : > { %1894 = vst [vmem:[%s3200_s17 + $0x200] sm:$0xff] %v1304_v48  ;;  %1895 = vst [vmem:[%s3200_s17 + $0x208] sm:$0xff] %v1425_v49  ;;  %v1308_v52 = vadd.f32 %v1307_v50, %v3188_v25  ;;  %v1427_v53 = vadd.f32 %v1426_v51, %v3204_v47 }
 0x12e   : > { %v1309_v54 = vpop.f32.mrf.mxu0  ;;  %v1430_v55 = vpop.f32.mrf.mxu1 }
 0x12f   : > { %1902 = vst [vmem:[%s3200_s17 + $0x240] sm:$0xff] %v1308_v52  ;;  %1896 = vst [vmem:[%s3200_s17 + $0x210] sm:$0xff] %v1427_v53  ;;  %v1310_v56 = vadd.f32 %v1309_v54, %v3192_v35  ;;  %v1431_v57 = vadd.f32 %v1430_v55, %v3195_v42 }
 0x130   : > { %v1311_v58 = vpop.f32.mrf.mxu0  ;;  %v1432_v59 = vpop.f32.mrf.mxu1 }
 0x131   : > { %1903 = vst [vmem:[%s3200_s17 + $0x248] sm:$0xff] %v1310_v56  ;;  %1904 = vst [vmem:[%s3200_s17 + $0x250] sm:$0xff] %v1431_v57  ;;  %v1312_v60 = vadd.f32 %v1311_v58, %v3188_v25  ;;  %v1433_v61 = vadd.f32 %v1432_v59, %v3204_v47 }
 0x132   : > { %v1313_v62 = vpop.f32.mrf.mxu0  ;;  %v1434_v63 = vpop.f32.mrf.mxu1 }
 0x133   : > { %1911 = vst [vmem:[%s3200_s17 + $0x288] sm:$0xff] %v1312_v60  ;;  %1905 = vst [vmem:[%s3200_s17 + $0x258] sm:$0xff] %v1433_v61  ;;  %v1314_v0 = vadd.f32 %v1313_v62, %v3192_v35  ;;  %v1435_v1 = vadd.f32 %v1434_v63, %v3195_v42  ;;  %v380_v60 = vsub.s32 4, %v3176_v2 }
 0x134   : > { %v1317_v3 = vpop.f32.mrf.mxu0  ;;  %v1436_v4 = vpop.f32.mrf.mxu1 }
 0x135   : > { %1912 = vst [vmem:[%s3200_s17 + $0x290] sm:$0xff] %v1314_v0  ;;  %1913 = vst [vmem:[%s3200_s17 + $0x298] sm:$0xff] %v1435_v1  ;;  %v1318_v6 = vadd.f32 %v1317_v3, %v3188_v25  ;;  %v1437_v7 = vadd.f32 %v1436_v4, %v3204_v47  ;;  %v384_v1 = vsub.s32 5, %v3176_v2  ;;  %v388_v3 = vsub.s32 6, %v3176_v2 }
 0x136   : > { %v1319_v8 = vpop.f32.mrf.mxu0  ;;  %v1440_v9 = vpop.f32.mrf.mxu1 }
 0x137   : > { %1920 = vst [vmem:[%s3200_s17 + $0x2d0] sm:$0xff] %v1318_v6  ;;  %1914 = vst [vmem:[%s3200_s17 + $0x2a0] sm:$0xff] %v1437_v7  ;;  %v1320_v11 = vadd.f32 %v1319_v8, %v3192_v35  ;;  %v1441_v12 = vadd.f32 %v1440_v9, %v3195_v42  ;;  %v3345_v9 = vrot.slane %v3182_v10, %v380_v60 }
 0x138   : > { %v1321_v13 = vpop.f32.mrf.mxu0  ;;  %v1442_v14 = vpop.f32.mrf.mxu1 }
 0x139   : > { %1921 = vst [vmem:[%s3200_s17 + $0x2d8] sm:$0xff] %v1320_v11  ;;  %1922 = vst [vmem:[%s3200_s17 + $0x2e0] sm:$0xff] %v1441_v12  ;;  %v1322_v16 = vadd.f32 %v1321_v13, %v3188_v25  ;;  %v1443_v17 = vadd.f32 %v1442_v14, %v3204_v47  ;;  %v392_v11 = vsub.s32 7, %v3176_v2 }
 0x13a   : > { %v1323_v18 = vpop.f32.mrf.mxu0  ;;  %v1444_v19 = vpop.f32.mrf.mxu1 }
 0x13b   : > { %1929 = vst [vmem:[%s3200_s17 + $0x318] sm:$0xff] %v1322_v16  ;;  %1923 = vst [vmem:[%s3200_s17 + $0x2e8] sm:$0xff] %v1443_v17  ;;  %v1324_v21 = vadd.f32 %v1323_v18, %v3192_v35  ;;  %v1445_v22 = vadd.f32 %v1444_v19, %v3195_v42  ;;  %v3353_v17 = vrot.slane %v3182_v10, %v384_v1 }
 0x13c   : > { %v1327_v23 = vpop.f32.mrf.mxu0  ;;  %v1446_v24 = vpop.f32.mrf.mxu1 }
 0x13d   : > { %1930 = vst [vmem:[%s3200_s17 + $0x320] sm:$0xff] %v1324_v21  ;;  %1931 = vst [vmem:[%s3200_s17 + $0x328] sm:$0xff] %v1445_v22  ;;  %v1328_v26 = vadd.f32 %v1327_v23, %v3188_v25  ;;  %v1447_v27 = vadd.f32 %v1446_v24, %v3204_v47 }
 0x13e   : > { %v1329_v28 = vpop.f32.mrf.mxu0  ;;  %v1450_v29 = vpop.f32.mrf.mxu1 }
 0x13f   : > { %1938 = vst [vmem:[%s3200_s17 + $0x360] sm:$0xff] %v1328_v26  ;;  %1932 = vst [vmem:[%s3200_s17 + $0x330] sm:$0xff] %v1447_v27  ;;  %v1330_v30 = vadd.f32 %v1329_v28, %v3192_v35  ;;  %v1451_v31 = vadd.f32 %v1450_v29, %v3195_v42 }
 0x140   : > { %v1331_v33 = vpop.f32.mrf.mxu0  ;;  %v1452_v34 = vpop.f32.mrf.mxu1 }
 0x141   : > { %1939 = vst [vmem:[%s3200_s17 + $0x368] sm:$0xff] %v1330_v30  ;;  %1940 = vst [vmem:[%s3200_s17 + $0x370] sm:$0xff] %v1451_v31  ;;  %v1332_v36 = vadd.f32 %v1331_v33, %v3188_v25  ;;  %v1453_v37 = vadd.f32 %v1452_v34, %v3204_v47 }
 0x142   : > { %v1333_v38 = vpop.f32.mrf.mxu0  ;;  %v1454_v39 = vpop.f32.mrf.mxu1 }
 0x143   : > { %1947 = vst [vmem:[%s3200_s17 + $0x3a8] sm:$0xff] %v1332_v36  ;;  %1941 = vst [vmem:[%s3200_s17 + $0x378] sm:$0xff] %v1453_v37  ;;  %v1334_v40 = vadd.f32 %v1333_v38, %v3192_v35  ;;  %v1455_v41 = vadd.f32 %v1454_v39, %v3195_v42 }
 0x144   : > { %v1337_v43 = vpop.f32.mrf.mxu0  ;;  %v1456_v46 = vpop.f32.mrf.mxu1 }
 0x145   : > { %1948 = vst [vmem:[%s3200_s17 + $0x3b0] sm:$0xff] %v1334_v40  ;;  %1949 = vst [vmem:[%s3200_s17 + $0x3b8] sm:$0xff] %v1455_v41  ;;  %v1338_v5 = vadd.f32 %v1337_v43, %v3188_v25  ;;  %v1457_v15 = vadd.f32 %v1456_v46, %v3204_v47 }
 0x146   : > { %v1339_v20 = vpop.f32.mrf.mxu0  ;;  %v1460_v32 = vpop.f32.mrf.mxu1 }
 0x147   : > { %1956 = vst [vmem:[%s3200_s17 + $0x3f0] sm:$0xff] %v1338_v5  ;;  %1950 = vst [vmem:[%s3200_s17 + $0x3c0] sm:$0xff] %v1457_v15  ;;  %v1340_v44 = vadd.f32 %v1339_v20, %v3192_v35  ;;  %v1461_v45 = vadd.f32 %v1460_v32, %v3195_v42 }
 0x148   : > { %v1341_v48 = vpop.f32.mrf.mxu0  ;;  %v1462_v49 = vpop.f32.mrf.mxu1 }
 0x149   : > { %1957 = vst [vmem:[%s3200_s17 + $0x3f8] sm:$0xff] %v1340_v44  ;;  %1958 = vst [vmem:[%s3200_s17 + $0x400] sm:$0xff] %v1461_v45  ;;  %v1342_v50 = vadd.f32 %v1341_v48, %v3188_v25  ;;  %v1463_v51 = vadd.f32 %v1462_v49, %v3204_v47 }
 0x14a   : > { %v1343_v52 = vpop.f32.mrf.mxu0  ;;  %v1464_v53 = vpop.f32.mrf.mxu1 }
 0x14b   : > { %1965 = vst [vmem:[%s3200_s17 + $0x438] sm:$0xff] %v1342_v50  ;;  %1959 = vst [vmem:[%s3200_s17 + $0x408] sm:$0xff] %v1463_v51  ;;  %v1344_v54 = vadd.f32 %v1343_v52, %v3192_v35  ;;  %v1465_v55 = vadd.f32 %v1464_v53, %v3195_v42 }
 0x14c   : > { %v1347_v56 = vpop.f32.mrf.mxu0  ;;  %v1466_v57 = vpop.f32.mrf.mxu1 }
 0x14d   : > { %1966 = vst [vmem:[%s3200_s17 + $0x440] sm:$0xff] %v1344_v54  ;;  %1967 = vst [vmem:[%s3200_s17 + $0x448] sm:$0xff] %v1465_v55  ;;  %v1348_v58 = vadd.f32 %v1347_v56, %v3188_v25  ;;  %v1467_v59 = vadd.f32 %v1466_v57, %v3204_v47 }
 0x14e   : > { %v1349_v61 = vpop.f32.mrf.mxu0  ;;  %v1470_v62 = vpop.f32.mrf.mxu1 }
 0x14f   : > { %1974 = vst [vmem:[%s3200_s17 + $0x480] sm:$0xff] %v1348_v58  ;;  %1968 = vst [vmem:[%s3200_s17 + $0x450] sm:$0xff] %v1467_v59  ;;  %v1350_v63 = vadd.f32 %v1349_v61, %v3192_v35  ;;  %v1471_v0 = vadd.f32 %v1470_v62, %v3195_v42 }
 0x150   : > { %v1351_v4 = vpop.f32.mrf.mxu0  ;;  %v1472_v6 = vpop.f32.mrf.mxu1 }
 0x151   : > { %1975 = vst [vmem:[%s3200_s17 + $0x488] sm:$0xff] %v1350_v63  ;;  %1976 = vst [vmem:[%s3200_s17 + $0x490] sm:$0xff] %v1471_v0  ;;  %v1352_v7 = vadd.f32 %v1351_v4, %v3188_v25  ;;  %v1473_v8 = vadd.f32 %v1472_v6, %v3204_v47  ;;  %v3356_v25 = vrot.slane %v3182_v10, %v388_v3 }
 0x152   : > { %v1353_v12 = vpop.f32.mrf.mxu0  ;;  %v1474_v13 = vpop.f32.mrf.mxu1 }
 0x153   : > { %1983 = vst [vmem:[%s3200_s17 + $0x4c8] sm:$0xff] %v1352_v7  ;;  %1977 = vst [vmem:[%s3200_s17 + $0x498] sm:$0xff] %v1473_v8  ;;  %v1354_v14 = vadd.f32 %v1353_v12, %v3192_v35  ;;  %v1475_v16 = vadd.f32 %v1474_v13, %v3195_v42  ;;  %v3363_v35 = vrot.slane %v3182_v10, %v392_v11 }
 0x154   : > { %v1513_v18 = vpop.f32.mrf.mxu0  ;;  %v1476_v2 = vpop.f32.mrf.mxu1 }
 0x155   : > { %1984 = vst [vmem:[%s3200_s17 + $0x4d0] sm:$0xff] %v1354_v14  ;;  %1985 = vst [vmem:[%s3200_s17 + $0x4d8] sm:$0xff] %v1475_v16  ;;  %v1514_v19 = vadd.f32 %v1513_v18, %v3345_v9  ;;  %v1477_v21 = vadd.f32 %v1476_v2, %v3204_v47 }
 0x156   : > { %v1515_v42 = vpop.f32.mrf.mxu0  ;;  %v1636_v22 = vpop.f32.mrf.mxu1 }
 0x157   : > { %1834 = vst [vmem:[%s3200_s17 + $0x20] sm:$0xff] %v1514_v19  ;;  %1986 = vst [vmem:[%s3200_s17 + $0x4e0] sm:$0xff] %v1477_v21  ;;  %v1516_v23 = vadd.f32 %v1515_v42, %v3353_v17  ;;  %v1637_v24 = vadd.f32 %v1636_v22, %v3356_v25 }
 0x158   : > { %v1517_v26 = vpop.f32.mrf.mxu0  ;;  %v1638_v27 = vpop.f32.mrf.mxu1 }
 0x159   : > { %1835 = vst [vmem:[%s3200_s17 + $0x28] sm:$0xff] %v1516_v23  ;;  %1836 = vst [vmem:[%s3200_s17 + $0x30] sm:$0xff] %v1637_v24  ;;  %v1518_v47 = vadd.f32 %v1517_v26, %v3345_v9  ;;  %v1639_v10 = vadd.f32 %v1638_v27, %v3363_v35 }
 0x15a   : > { %v1519_v28 = vpop.f32.mrf.mxu0  ;;  %v1640_v29 = vpop.f32.mrf.mxu1 }
 0x15b   : > { %1843 = vst [vmem:[%s3200_s17 + $0x68] sm:$0xff] %v1518_v47  ;;  %1837 = vst [vmem:[%s3200_s17 + $0x38] sm:$0xff] %v1639_v10  ;;  %v1520_v30 = vadd.f32 %v1519_v28, %v3353_v17  ;;  %v1641_v31 = vadd.f32 %v1640_v29, %v3356_v25 }
 0x15c   : > { %v1523_v33 = vpop.f32.mrf.mxu0  ;;  %v1642_v34 = vpop.f32.mrf.mxu1 }
 0x15d   : > { %1844 = vst [vmem:[%s3200_s17 + $0x70] sm:$0xff] %v1520_v30  ;;  %1845 = vst [vmem:[%s3200_s17 + $0x78] sm:$0xff] %v1641_v31  ;;  %v1524_v36 = vadd.f32 %v1523_v33, %v3345_v9  ;;  %v1643_v37 = vadd.f32 %v1642_v34, %v3363_v35 }
 0x15e   : > { %v1525_v38 = vpop.f32.mrf.mxu0  ;;  %v1646_v39 = vpop.f32.mrf.mxu1 }
 0x15f   : > { %1852 = vst [vmem:[%s3200_s17 + $0xb0] sm:$0xff] %v1524_v36  ;;  %1846 = vst [vmem:[%s3200_s17 + $0x80] sm:$0xff] %v1643_v37  ;;  %v1526_v40 = vadd.f32 %v1525_v38, %v3353_v17  ;;  %v1647_v41 = vadd.f32 %v1646_v39, %v3356_v25 }
 0x160   : > { %v1527_v43 = vpop.f32.mrf.mxu0  ;;  %v1648_v46 = vpop.f32.mrf.mxu1 }
 0x161   : > { %1853 = vst [vmem:[%s3200_s17 + $0xb8] sm:$0xff] %v1526_v40  ;;  %1854 = vst [vmem:[%s3200_s17 + $0xc0] sm:$0xff] %v1647_v41  ;;  %v1528_v5 = vadd.f32 %v1527_v43, %v3345_v9  ;;  %v1649_v15 = vadd.f32 %v1648_v46, %v3363_v35 }
 0x162   : > { %v1529_v20 = vpop.f32.mrf.mxu0  ;;  %v1650_v32 = vpop.f32.mrf.mxu1 }
 0x163   : > { %1861 = vst [vmem:[%s3200_s17 + $0xf8] sm:$0xff] %v1528_v5  ;;  %1855 = vst [vmem:[%s3200_s17 + $0xc8] sm:$0xff] %v1649_v15  ;;  %v1530_v44 = vadd.f32 %v1529_v20, %v3353_v17  ;;  %v1651_v45 = vadd.f32 %v1650_v32, %v3356_v25 }
 0x164   : > { %v1533_v48 = vpop.f32.mrf.mxu0  ;;  %v1652_v49 = vpop.f32.mrf.mxu1 }
 0x165   : > { %1862 = vst [vmem:[%s3200_s17 + $0x100] sm:$0xff] %v1530_v44  ;;  %1863 = vst [vmem:[%s3200_s17 + $0x108] sm:$0xff] %v1651_v45  ;;  %v1534_v50 = vadd.f32 %v1533_v48, %v3345_v9  ;;  %v1653_v51 = vadd.f32 %v1652_v49, %v3363_v35 }
 0x166   : > { %v1535_v52 = vpop.f32.mrf.mxu0  ;;  %v1656_v53 = vpop.f32.mrf.mxu1 }
 0x167   : > { %1870 = vst [vmem:[%s3200_s17 + $0x140] sm:$0xff] %v1534_v50  ;;  %1864 = vst [vmem:[%s3200_s17 + $0x110] sm:$0xff] %v1653_v51  ;;  %v1536_v54 = vadd.f32 %v1535_v52, %v3353_v17  ;;  %v1657_v55 = vadd.f32 %v1656_v53, %v3356_v25 }
 0x168   : > { %v1537_v56 = vpop.f32.mrf.mxu0  ;;  %v1658_v57 = vpop.f32.mrf.mxu1 }
 0x169   : > { %1871 = vst [vmem:[%s3200_s17 + $0x148] sm:$0xff] %v1536_v54  ;;  %1872 = vst [vmem:[%s3200_s17 + $0x150] sm:$0xff] %v1657_v55  ;;  %v1538_v58 = vadd.f32 %v1537_v56, %v3345_v9  ;;  %v1659_v59 = vadd.f32 %v1658_v57, %v3363_v35 }
 0x16a   : > { %v1539_v60 = vpop.f32.mrf.mxu0  ;;  %v1660_v61 = vpop.f32.mrf.mxu1 }
 0x16b   : > { %1879 = vst [vmem:[%s3200_s17 + $0x188] sm:$0xff] %v1538_v58  ;;  %1873 = vst [vmem:[%s3200_s17 + $0x158] sm:$0xff] %v1659_v59  ;;  %v1540_v62 = vadd.f32 %v1539_v60, %v3353_v17  ;;  %v1661_v63 = vadd.f32 %v1660_v61, %v3356_v25 }
 0x16c   : > { %v1543_v0 = vpop.f32.mrf.mxu0  ;;  %v1662_v1 = vpop.f32.mrf.mxu1 }
 0x16d   : > { %1880 = vst [vmem:[%s3200_s17 + $0x190] sm:$0xff] %v1540_v62  ;;  %1881 = vst [vmem:[%s3200_s17 + $0x198] sm:$0xff] %v1661_v63  ;;  %v1544_v3 = vadd.f32 %v1543_v0, %v3345_v9  ;;  %v1663_v4 = vadd.f32 %v1662_v1, %v3363_v35 }
 0x16e   : > { %v1545_v6 = vpop.f32.mrf.mxu0  ;;  %v1666_v7 = vpop.f32.mrf.mxu1 }
 0x16f   : > { %1888 = vst [vmem:[%s3200_s17 + $0x1d0] sm:$0xff] %v1544_v3  ;;  %1882 = vst [vmem:[%s3200_s17 + $0x1a0] sm:$0xff] %v1663_v4  ;;  %v1546_v8 = vadd.f32 %v1545_v6, %v3353_v17  ;;  %v1667_v11 = vadd.f32 %v1666_v7, %v3356_v25 }
 0x170   : > { %v1547_v12 = vpop.f32.mrf.mxu0  ;;  %v1668_v13 = vpop.f32.mrf.mxu1 }
 0x171   : > { %1889 = vst [vmem:[%s3200_s17 + $0x1d8] sm:$0xff] %v1546_v8  ;;  %1890 = vst [vmem:[%s3200_s17 + $0x1e0] sm:$0xff] %v1667_v11  ;;  %v1548_v14 = vadd.f32 %v1547_v12, %v3345_v9  ;;  %v1669_v16 = vadd.f32 %v1668_v13, %v3363_v35 }
 0x172   : > { %v1549_v18 = vpop.f32.mrf.mxu0  ;;  %v1670_v2 = vpop.f32.mrf.mxu1 }
 0x173   : > { %1897 = vst [vmem:[%s3200_s17 + $0x218] sm:$0xff] %v1548_v14  ;;  %1891 = vst [vmem:[%s3200_s17 + $0x1e8] sm:$0xff] %v1669_v16  ;;  %v1550_v19 = vadd.f32 %v1549_v18, %v3353_v17  ;;  %v1671_v21 = vadd.f32 %v1670_v2, %v3356_v25 }
 0x174   : > { %v1553_v42 = vpop.f32.mrf.mxu0  ;;  %v1672_v22 = vpop.f32.mrf.mxu1 }
 0x175   : > { %1898 = vst [vmem:[%s3200_s17 + $0x220] sm:$0xff] %v1550_v19  ;;  %1899 = vst [vmem:[%s3200_s17 + $0x228] sm:$0xff] %v1671_v21  ;;  %v1554_v23 = vadd.f32 %v1553_v42, %v3345_v9  ;;  %v1673_v24 = vadd.f32 %v1672_v22, %v3363_v35 }
 0x176   : > { %v1555_v26 = vpop.f32.mrf.mxu0  ;;  %v1676_v27 = vpop.f32.mrf.mxu1 }
 0x177   : > { %1906 = vst [vmem:[%s3200_s17 + $0x260] sm:$0xff] %v1554_v23  ;;  %1900 = vst [vmem:[%s3200_s17 + $0x230] sm:$0xff] %v1673_v24  ;;  %v1556_v47 = vadd.f32 %v1555_v26, %v3353_v17  ;;  %v1677_v10 = vadd.f32 %v1676_v27, %v3356_v25 }
 0x178   : > { %v1557_v28 = vpop.f32.mrf.mxu0  ;;  %v1678_v29 = vpop.f32.mrf.mxu1 }
 0x179   : > { %1907 = vst [vmem:[%s3200_s17 + $0x268] sm:$0xff] %v1556_v47  ;;  %1908 = vst [vmem:[%s3200_s17 + $0x270] sm:$0xff] %v1677_v10  ;;  %v1558_v30 = vadd.f32 %v1557_v28, %v3345_v9  ;;  %v1679_v31 = vadd.f32 %v1678_v29, %v3363_v35 }
 0x17a   : > { %v1559_v33 = vpop.f32.mrf.mxu0  ;;  %v1680_v34 = vpop.f32.mrf.mxu1 }
 0x17b   : > { %1915 = vst [vmem:[%s3200_s17 + $0x2a8] sm:$0xff] %v1558_v30  ;;  %1909 = vst [vmem:[%s3200_s17 + $0x278] sm:$0xff] %v1679_v31  ;;  %v1560_v36 = vadd.f32 %v1559_v33, %v3353_v17  ;;  %v1681_v37 = vadd.f32 %v1680_v34, %v3356_v25 }
 0x17c   : > { %v1563_v38 = vpop.f32.mrf.mxu0  ;;  %v1682_v39 = vpop.f32.mrf.mxu1 }
 0x17d   : > { %1916 = vst [vmem:[%s3200_s17 + $0x2b0] sm:$0xff] %v1560_v36  ;;  %1917 = vst [vmem:[%s3200_s17 + $0x2b8] sm:$0xff] %v1681_v37  ;;  %v1564_v40 = vadd.f32 %v1563_v38, %v3345_v9  ;;  %v1683_v41 = vadd.f32 %v1682_v39, %v3363_v35 }
 0x17e   : > { %v1565_v43 = vpop.f32.mrf.mxu0  ;;  %v1686_v46 = vpop.f32.mrf.mxu1 }
 0x17f   : > { %1924 = vst [vmem:[%s3200_s17 + $0x2f0] sm:$0xff] %v1564_v40  ;;  %1918 = vst [vmem:[%s3200_s17 + $0x2c0] sm:$0xff] %v1683_v41  ;;  %v1566_v5 = vadd.f32 %v1565_v43, %v3353_v17  ;;  %v1687_v15 = vadd.f32 %v1686_v46, %v3356_v25 }
 0x180   : > { %v1567_v20 = vpop.f32.mrf.mxu0  ;;  %v1688_v32 = vpop.f32.mrf.mxu1 }
 0x181   : > { %1925 = vst [vmem:[%s3200_s17 + $0x2f8] sm:$0xff] %v1566_v5  ;;  %1926 = vst [vmem:[%s3200_s17 + $0x300] sm:$0xff] %v1687_v15  ;;  %v1568_v44 = vadd.f32 %v1567_v20, %v3345_v9  ;;  %v1689_v45 = vadd.f32 %v1688_v32, %v3363_v35 }
 0x182   : > { %v1569_v48 = vpop.f32.mrf.mxu0  ;;  %v1690_v49 = vpop.f32.mrf.mxu1 }
 0x183   : > { %1933 = vst [vmem:[%s3200_s17 + $0x338] sm:$0xff] %v1568_v44  ;;  %1927 = vst [vmem:[%s3200_s17 + $0x308] sm:$0xff] %v1689_v45  ;;  %v1570_v50 = vadd.f32 %v1569_v48, %v3353_v17  ;;  %v1691_v51 = vadd.f32 %v1690_v49, %v3356_v25 }
 0x184   : > { %v1573_v52 = vpop.f32.mrf.mxu0  ;;  %v1692_v53 = vpop.f32.mrf.mxu1 }
 0x185   : > { %1934 = vst [vmem:[%s3200_s17 + $0x340] sm:$0xff] %v1570_v50  ;;  %1935 = vst [vmem:[%s3200_s17 + $0x348] sm:$0xff] %v1691_v51  ;;  %v1574_v54 = vadd.f32 %v1573_v52, %v3345_v9  ;;  %v1693_v55 = vadd.f32 %v1692_v53, %v3363_v35 }
 0x186   : > { %v1575_v56 = vpop.f32.mrf.mxu0  ;;  %v1696_v57 = vpop.f32.mrf.mxu1 }
 0x187   : > { %1942 = vst [vmem:[%s3200_s17 + $0x380] sm:$0xff] %v1574_v54  ;;  %1936 = vst [vmem:[%s3200_s17 + $0x350] sm:$0xff] %v1693_v55  ;;  %v1576_v58 = vadd.f32 %v1575_v56, %v3353_v17  ;;  %v1697_v59 = vadd.f32 %v1696_v57, %v3356_v25 }
 0x188   : > { %v1577_v60 = vpop.f32.mrf.mxu0  ;;  %v1698_v61 = vpop.f32.mrf.mxu1 }
 0x189   : > { %1943 = vst [vmem:[%s3200_s17 + $0x388] sm:$0xff] %v1576_v58  ;;  %1944 = vst [vmem:[%s3200_s17 + $0x390] sm:$0xff] %v1697_v59  ;;  %v1578_v62 = vadd.f32 %v1577_v60, %v3345_v9  ;;  %v1699_v63 = vadd.f32 %v1698_v61, %v3363_v35 }
 0x18a   : > { %v1579_v0 = vpop.f32.mrf.mxu0  ;;  %v1700_v1 = vpop.f32.mrf.mxu1 }
 0x18b   : > { %1951 = vst [vmem:[%s3200_s17 + $0x3c8] sm:$0xff] %v1578_v62  ;;  %1945 = vst [vmem:[%s3200_s17 + $0x398] sm:$0xff] %v1699_v63  ;;  %v1580_v3 = vadd.f32 %v1579_v0, %v3353_v17  ;;  %v1701_v4 = vadd.f32 %v1700_v1, %v3356_v25 }
 0x18c   : > { %v1583_v6 = vpop.f32.mrf.mxu0  ;;  %v1702_v7 = vpop.f32.mrf.mxu1 }
 0x18d   : > { %1952 = vst [vmem:[%s3200_s17 + $0x3d0] sm:$0xff] %v1580_v3  ;;  %1953 = vst [vmem:[%s3200_s17 + $0x3d8] sm:$0xff] %v1701_v4  ;;  %v1584_v8 = vadd.f32 %v1583_v6, %v3345_v9  ;;  %v1703_v11 = vadd.f32 %v1702_v7, %v3363_v35 }
 0x18e   : > { %v1585_v12 = vpop.f32.mrf.mxu0  ;;  %v1706_v13 = vpop.f32.mrf.mxu1 }
 0x18f   : > { %1960 = vst [vmem:[%s3200_s17 + $0x410] sm:$0xff] %v1584_v8  ;;  %1954 = vst [vmem:[%s3200_s17 + $0x3e0] sm:$0xff] %v1703_v11  ;;  %v1586_v14 = vadd.f32 %v1585_v12, %v3353_v17  ;;  %v1707_v16 = vadd.f32 %v1706_v13, %v3356_v25 }
 0x190   : > { %v1587_v18 = vpop.f32.mrf.mxu0  ;;  %v1708_v2 = vpop.f32.mrf.mxu1 }
 0x191   : > { %1961 = vst [vmem:[%s3200_s17 + $0x418] sm:$0xff] %v1586_v14  ;;  %1962 = vst [vmem:[%s3200_s17 + $0x420] sm:$0xff] %v1707_v16  ;;  %v1588_v19 = vadd.f32 %v1587_v18, %v3345_v9  ;;  %v1709_v21 = vadd.f32 %v1708_v2, %v3363_v35 }
 0x192   : > { %v1589_v42 = vpop.f32.mrf.mxu0  ;;  %v1710_v22 = vpop.f32.mrf.mxu1 }
 0x193   : > { %1969 = vst [vmem:[%s3200_s17 + $0x458] sm:$0xff] %v1588_v19  ;;  %1963 = vst [vmem:[%s3200_s17 + $0x428] sm:$0xff] %v1709_v21  ;;  %v1590_v23 = vadd.f32 %v1589_v42, %v3353_v17  ;;  %v1711_v24 = vadd.f32 %v1710_v22, %v3356_v25 }
 0x194   : > { %v1593_v26 = vpop.f32.mrf.mxu0  ;;  %v1712_v27 = vpop.f32.mrf.mxu1 }
 0x195   : > { %1970 = vst [vmem:[%s3200_s17 + $0x460] sm:$0xff] %v1590_v23  ;;  %1971 = vst [vmem:[%s3200_s17 + $0x468] sm:$0xff] %v1711_v24  ;;  %v1594_v47 = vadd.f32 %v1593_v26, %v3345_v9  ;;  %v1713_v10 = vadd.f32 %v1712_v27, %v3363_v35 }
 0x196   : > { %v1595_v28 = vpop.f32.mrf.mxu0  ;;  %v1716_v29 = vpop.f32.mrf.mxu1 }
 0x197   : > { %1978 = vst [vmem:[%s3200_s17 + $0x4a0] sm:$0xff] %v1594_v47  ;;  %1972 = vst [vmem:[%s3200_s17 + $0x470] sm:$0xff] %v1713_v10  ;;  %v1596_v30 = vadd.f32 %v1595_v28, %v3353_v17  ;;  %v1717_v31 = vadd.f32 %v1716_v29, %v3356_v25 }
 0x198   : > { %v1597_v33 = vpop.f32.mrf.mxu0  ;;  %v1718_v34 = vpop.f32.mrf.mxu1 }
 0x199   : > { %1979 = vst [vmem:[%s3200_s17 + $0x4a8] sm:$0xff] %v1596_v30  ;;  %1980 = vst [vmem:[%s3200_s17 + $0x4b0] sm:$0xff] %v1717_v31  ;;  %v1598_v36 = vadd.f32 %v1597_v33, %v3345_v9  ;;  %v1719_v37 = vadd.f32 %v1718_v34, %v3363_v35  ;;  %v3511_v9 = vld [vmem:[%s3555_s2 + $0x8] ss:$0 sm:$0xff] }
 0x19a   : > { %v1599_v38 = vpop.f32.mrf.mxu0  ;;  %v1720_v39 = vpop.f32.mrf.mxu1 }
 0x19b   : > { %1987 = vst [vmem:[%s3200_s17 + $0x4e8] sm:$0xff] %v1598_v36  ;;  %1981 = vst [vmem:[%s3200_s17 + $0x4b8] sm:$0xff] %v1719_v37  ;;  %v1600_v40 = vadd.f32 %v1599_v38, %v3353_v17  ;;  %v1721_v41 = vadd.f32 %v1720_v39, %v3356_v25 }
 0x19c   : > { %v2240_v43 = vpop.f32.mrf.mxu0  ;;  %v1722_v46 = vpop.f32.mrf.mxu1 }
 0x19d   : > { %1988 = vst [vmem:[%s3200_s17 + $0x4f0] sm:$0xff] %v1600_v40  ;;  %1989 = vst [vmem:[%s3200_s17 + $0x4f8] sm:$0xff] %v1721_v41  ;;  %v1723_v5 = vadd.f32 %v1722_v46, %v3363_v35 }
 0x19e   : > { %v2241_v15 = vpop.f32.mrf.mxu0  ;;  %v2270_v20 = vpop.f32.mrf.mxu1 }
 0x19f   : > { %1990 = vst [vmem:[%s3200_s17 + $0x500] sm:$0xff] %v1723_v5  ;;  %v2242_v32 = vadd.f32 %v2241_v15, %v2240_v43 }
 0x1a0   : > { %v2243_v17 = vpop.f32.mrf.mxu0  ;;  %v2271_v25 = vpop.f32.mrf.mxu1 }
 0x1a1   : > { %v1760_v44 = vadd.f32 %v2242_v32, %v3511_v9  ;;  %v2272_v45 = vadd.f32 %v2271_v25, %v2270_v20 }
 0x1a2   : > { %v2244_v48 = vpop.f32.mrf.mxu0  ;;  %v2273_v49 = vpop.f32.mrf.mxu1 }
 0x1a3   : > { %1838 = vst [vmem:[%s3200_s17 + $0x40] sm:$0xff] %v1760_v44  ;;  %v1800_v35 = vadd.f32 %v2272_v45, %v3511_v9  ;;  %v2245_v50 = vadd.f32 %v2244_v48, %v2243_v17 }
 0x1a4   : > { %v2246_v51 = vpop.f32.mrf.mxu0  ;;  %v2274_v52 = vpop.f32.mrf.mxu1 }
 0x1a5   : > { %1928 = vst [vmem:[%s3200_s17 + $0x310] sm:$0xff] %v1800_v35  ;;  %v1763_v53 = vadd.f32 %v2245_v50, %v3511_v9  ;;  %v2275_v54 = vadd.f32 %v2274_v52, %v2273_v49 }
 0x1a6   : > { %v2247_v55 = vpop.f32.mrf.mxu0  ;;  %v2276_v56 = vpop.f32.mrf.mxu1 }
 0x1a7   : > { %1847 = vst [vmem:[%s3200_s17 + $0x88] sm:$0xff] %v1763_v53  ;;  %v1803_v57 = vadd.f32 %v2275_v54, %v3511_v9  ;;  %v2248_v58 = vadd.f32 %v2247_v55, %v2246_v51 }
 0x1a8   : > { %v2249_v59 = vpop.f32.mrf.mxu0  ;;  %v2277_v60 = vpop.f32.mrf.mxu1 }
 0x1a9   : > { %1937 = vst [vmem:[%s3200_s17 + $0x358] sm:$0xff] %v1803_v57  ;;  %v1768_v61 = vadd.f32 %v2248_v58, %v3511_v9  ;;  %v2278_v62 = vadd.f32 %v2277_v60, %v2276_v56 }
 0x1aa   : > { %v2250_v63 = vpop.f32.mrf.mxu0  ;;  %v2279_v0 = vpop.f32.mrf.mxu1 }
 0x1ab   : > { %1856 = vst [vmem:[%s3200_s17 + $0xd0] sm:$0xff] %v1768_v61  ;;  %v1808_v1 = vadd.f32 %v2278_v62, %v3511_v9  ;;  %v2251_v3 = vadd.f32 %v2250_v63, %v2249_v59 }
 0x1ac   : > { %v2252_v4 = vpop.f32.mrf.mxu0  ;;  %v2280_v6 = vpop.f32.mrf.mxu1 }
 0x1ad   : > { %1946 = vst [vmem:[%s3200_s17 + $0x3a0] sm:$0xff] %v1808_v1  ;;  %v1771_v7 = vadd.f32 %v2251_v3, %v3511_v9  ;;  %v2281_v8 = vadd.f32 %v2280_v6, %v2279_v0 }
 0x1ae   : > { %v2253_v11 = vpop.f32.mrf.mxu0  ;;  %v2282_v12 = vpop.f32.mrf.mxu1 }
 0x1af   : > { %1865 = vst [vmem:[%s3200_s17 + $0x118] sm:$0xff] %v1771_v7  ;;  %v1811_v13 = vadd.f32 %v2281_v8, %v3511_v9  ;;  %v2254_v14 = vadd.f32 %v2253_v11, %v2252_v4 }
 0x1b0   : > { %v2255_v16 = vpop.f32.mrf.mxu0  ;;  %v2283_v18 = vpop.f32.mrf.mxu1 }
 0x1b1   : > { %1955 = vst [vmem:[%s3200_s17 + $0x3e8] sm:$0xff] %v1811_v13  ;;  %v1776_v2 = vadd.f32 %v2254_v14, %v3511_v9  ;;  %v2284_v19 = vadd.f32 %v2283_v18, %v2282_v12 }
 0x1b2   : > { %v2256_v21 = vpop.f32.mrf.mxu0  ;;  %v2285_v42 = vpop.f32.mrf.mxu1 }
 0x1b3   : > { %1874 = vst [vmem:[%s3200_s17 + $0x160] sm:$0xff] %v1776_v2  ;;  %v1816_v22 = vadd.f32 %v2284_v19, %v3511_v9  ;;  %v2257_v23 = vadd.f32 %v2256_v21, %v2255_v16 }
 0x1b4   : > { %v2258_v24 = vpop.f32.mrf.mxu0  ;;  %v2286_v26 = vpop.f32.mrf.mxu1 }
 0x1b5   : > { %1964 = vst [vmem:[%s3200_s17 + $0x430] sm:$0xff] %v1816_v22  ;;  %v1779_v27 = vadd.f32 %v2257_v23, %v3511_v9  ;;  %v2287_v47 = vadd.f32 %v2286_v26, %v2285_v42 }
 0x1b6   : > { %v2259_v10 = vpop.f32.mrf.mxu0  ;;  %v2288_v28 = vpop.f32.mrf.mxu1 }
 0x1b7   : > { %1883 = vst [vmem:[%s3200_s17 + $0x1a8] sm:$0xff] %v1779_v27  ;;  %v1819_v29 = vadd.f32 %v2287_v47, %v3511_v9  ;;  %v2260_v30 = vadd.f32 %v2259_v10, %v2258_v24 }
 0x1b8   : > { %v2261_v31 = vpop.f32.mrf.mxu0  ;;  %v2289_v33 = vpop.f32.mrf.mxu1 }
 0x1b9   : > { %1973 = vst [vmem:[%s3200_s17 + $0x478] sm:$0xff] %v1819_v29  ;;  %v1784_v34 = vadd.f32 %v2260_v30, %v3511_v9  ;;  %v2290_v36 = vadd.f32 %v2289_v33, %v2288_v28 }
 0x1ba   : > { %v2262_v37 = vpop.f32.mrf.mxu0  ;;  %v2291_v38 = vpop.f32.mrf.mxu1 }
 0x1bb   : > { %1892 = vst [vmem:[%s3200_s17 + $0x1f0] sm:$0xff] %v1784_v34  ;;  %v1824_v39 = vadd.f32 %v2290_v36, %v3511_v9  ;;  %v2263_v40 = vadd.f32 %v2262_v37, %v2261_v31 }
 0x1bc   : > { %v2264_v41 = vpop.f32.mrf.mxu0  ;;  %v2292_v43 = vpop.f32.mrf.mxu1 }
 0x1bd   : > { %1982 = vst [vmem:[%s3200_s17 + $0x4c0] sm:$0xff] %v1824_v39  ;;  %v1787_v46 = vadd.f32 %v2263_v40, %v3511_v9  ;;  %v2293_v5 = vadd.f32 %v2292_v43, %v2291_v38 }
 0x1be   : > { %v2265_v15 = vpop.f32.mrf.mxu0 }
 0x1bf   : > { %1901 = vst [vmem:[%s3200_s17 + $0x238] sm:$0xff] %v1787_v46  ;;  %v1827_v20 = vadd.f32 %v2293_v5, %v3511_v9  ;;  %v2266_v32 = vadd.f32 %v2265_v15, %v2264_v41 }
 0x1c0   : > { %v2267_v17 = vpop.f32.mrf.mxu0 }
 0x1c1   : > { %1991 = vst [vmem:[%s3200_s17 + $0x508] sm:$0xff] %v1827_v20  ;;  %v1792_v25 = vadd.f32 %v2266_v32, %v3511_v9 }
 0x1c2   : > { %v2268_v44 = vpop.f32.mrf.mxu0 }
 0x1c3   : > { %1910 = vst [vmem:[%s3200_s17 + $0x280] sm:$0xff] %v1792_v25  ;;  %v2269_v45 = vadd.f32 %v2268_v44, %v2267_v17 }
 0x1c5   : > { %v1795_v48 = vadd.f32 %v2269_v45, %v3511_v9 }
 0x1c7   : > { %1919 = vst [vmem:[%s3200_s17 + $0x2c8] sm:$0xff] %v1795_v48 }
 0x1c8 PF: > { %s13_s12 = sadd.s32 1, %s2560_s12  }
 0x1c9   : > { %p10_p4 = scmp.ge.s32.totalorder %s13_s12, 4  }
 0x1cb   :  { %12 = sbr.rel (!%p10_p4) target bundleno = 1 (0x1), region = 62 }

</bundles_post_ra>
